<compile_context>
chip_gen: v7x
topology: tpu7x:2x2x1
jax: 0.10.0
libtpu: 0.0.40
codegen_flags: <defaults>
</compile_context>

<pallas_src>
import math

import jax
import jax.numpy as jnp
from jax.experimental import pallas as pl
from jax.experimental.pallas import tpu as pltpu

# ---------------------------------------------------------------------------
# Scaled-down config
# ---------------------------------------------------------------------------
BERT_HIDDEN_SIZE = 128          # real model: 768
NUM_HEADS = 2                   # real model: 12
HEAD_DIM = BERT_HIDDEN_SIZE // NUM_HEADS
FFN_SIZE = 4 * BERT_HIDDEN_SIZE
NUM_LAYERS = 2                  # real model: 12
VOCAB = 64
MAX_POS = 32
SEQ = 8
BATCH = 2
NUM_SENTIMENT = 5
LN_EPS = 1e-12


# ---------------------------------------------------------------------------
# In-kernel helpers (all f32 elementwise math)
# ---------------------------------------------------------------------------
def _layernorm(x, g, b):
    mu = jnp.mean(x, axis=-1, keepdims=True)
    var = jnp.mean(jnp.square(x - mu), axis=-1, keepdims=True)
    return (x - mu) * jax.lax.rsqrt(var + LN_EPS) * g + b


def _gelu(x):
    # TODO(synk): BERT uses exact erf-based GELU; tanh approximation used here.
    c = math.sqrt(2.0 / math.pi)
    return 0.5 * x * (1.0 + jnp.tanh(c * (x + 0.044715 * x * x * x)))


# ---------------------------------------------------------------------------
# Fused encoder kernel: embedding LN + all layers in ONE invocation (no grid)
# ---------------------------------------------------------------------------
def encoder_kernel(emb_ref, mask_ref, hmask_ref, eg_ref, eb_ref,
                   wqkv_ref, bqkv_ref, wo_ref, bo_ref, ln1g_ref, ln1b_ref,
                   w1_ref, b1_ref, w2_ref, b2_ref, ln2g_ref, ln2b_ref,
                   out_ref):
    T, H = out_ref.shape
    scale = 1.0 / math.sqrt(HEAD_DIM)

    # Embedding LayerNorm
    x = _layernorm(emb_ref[...], eg_ref[...], eb_ref[...])        # [T, H] f32
    amask = mask_ref[...]                                         # [T, T] additive

    for l in range(NUM_LAYERS):          # static unroll; all weights VMEM-resident
        xb = x.astype(jnp.bfloat16)

        # Fused QKV projection: one MXU push with N = 3H (= 384).
        qkv = jnp.dot(xb, wqkv_ref[l],
                      preferred_element_type=jnp.float32) + bqkv_ref[l]   # [T, 3H]
        q = qkv[:, 0 * H:1 * H]          # 128-lane-aligned slices — free
        k = qkv[:, 1 * H:2 * H]
        v = qkv[:, 2 * H:3 * H]
        kb = k.astype(jnp.bfloat16)

        # Multi-head attention with batch folded into rows (block-diag mask) and
        # heads selected by 0/1 column masks (no lane-crossing slices, no ctx stores).
        ctx = jnp.zeros((T, H), jnp.float32)
        for h in range(NUM_HEADS):       # static unroll (2 heads)
            hm = hmask_ref[h]                                     # [1, H] 0/1 selector
            qh = (q * hm).astype(jnp.bfloat16)
            s = jnp.einsum("qd,kd->qk", qh, kb,
                           preferred_element_type=jnp.float32) * scale    # [T, T]
            s = s + amask
            s = s - jnp.max(s, axis=-1, keepdims=True)
            p = jnp.exp(s)
            p = p / jnp.sum(p, axis=-1, keepdims=True)            # exact softmax
            vh = (v * hm).astype(jnp.bfloat16)
            ctx = ctx + jnp.dot(p.astype(jnp.bfloat16), vh,
                                preferred_element_type=jnp.float32)       # [T, H]

        attn = jnp.dot(ctx.astype(jnp.bfloat16), wo_ref[l],
                       preferred_element_type=jnp.float32) + bo_ref[l]
        x1 = _layernorm(x + attn, ln1g_ref[l], ln1b_ref[l])

        inter = _gelu(jnp.dot(x1.astype(jnp.bfloat16), w1_ref[l],
                              preferred_element_type=jnp.float32) + b1_ref[l])
        ffn = jnp.dot(inter.astype(jnp.bfloat16), w2_ref[l],
                      preferred_element_type=jnp.float32) + b2_ref[l]
        x = _layernorm(x1 + ffn, ln2g_ref[l], ln2b_ref[l])

    out_ref[...] = x


def bert_encoder(emb_flat, add_mask, params):
    """Run embedding-LN + all transformer layers in one fused pallas_call."""
    T, H = emb_flat.shape
    return pl.pallas_call(
        encoder_kernel,
        out_shape=jax.ShapeDtypeStruct((T, H), jnp.float32),
        # No grid / no BlockSpecs: single invocation, every operand mapped whole into
        # VMEM (total < 1 MiB).  Fits comfortably on v5e/v6e/v7x.
        compiler_params=pltpu.CompilerParams(vmem_limit_bytes=32 * 1024 * 1024),
    )(emb_flat, add_mask, params["head_mask"],
      params["emb_ln_g"], params["emb_ln_b"],
      params["wqkv"], params["bqkv"], params["wo"], params["bo"],
      params["ln1_g"], params["ln1_b"],
      params["w1"], params["b1"], params["w2"], params["b2"],
      params["ln2_g"], params["ln2_b"])


# ---------------------------------------------------------------------------
# MultitaskBERT API (task heads stay in plain XLA — a pallas_call for a
# [2,128]x[128,5] matmul / cosine is pure launch overhead)
# ---------------------------------------------------------------------------
def bert_forward(params, input_ids, attention_mask):
    """Equivalent of MultitaskBERT.forward: returns the CLS token rep [B, H]."""
    B, S = input_ids.shape
    H = BERT_HIDDEN_SIZE
    T = B * S
    emb = (params["word_emb"][input_ids]                       # gather in XLA
           + params["pos_emb"][:S][None, :, :]
           + params["type_emb"][0][None, None, :])             # [B, S, H]
    emb_flat = emb.reshape(T, H)
    # Block-diagonal additive mask [T, T]: folds the batch into matmul rows.
    # Padded keys (BERT convention) and cross-batch pairs get -1e4, which underflows
    # to exactly 0 probability after softmax -> identical to per-sentence attention.
    key_ok = attention_mask.reshape(T).astype(jnp.float32) > 0.5
    batch_id = jnp.repeat(jnp.arange(B, dtype=jnp.int32), S)
    allow = (batch_id[:, None] == batch_id[None, :]) & key_ok[None, :]
    add_mask = jnp.where(allow, 0.0, -10000.0).astype(jnp.float32)
    x_flat = bert_encoder(emb_flat, add_mask, params)          # [B*S, H]
    return x_flat.reshape(B, S, H)[:, 0, :]                    # CLS token rep


@jax.jit
def predict_sentiment(params, input_ids, attention_mask):
    cls = bert_forward(params, input_ids, attention_mask)
    return cls @ params["sent_w"] + params["sent_b"]


@jax.jit
def predict_paraphrase(params, ids1, m1, ids2, m2):
    # Run the encoder ONCE on both sentence batches concatenated along batch.
    cls = bert_forward(params,
                       jnp.concatenate([ids1, ids2], axis=0),
                       jnp.concatenate([m1, m2], axis=0))
    c1, c2 = jnp.split(cls, 2, axis=0)
    return jnp.concatenate([c1, c2], axis=-1) @ params["para_w"] + params["para_b"]


@jax.jit
def predict_similarity(params, ids1, m1, ids2, m2):
    cls = bert_forward(params,
                       jnp.concatenate([ids1, ids2], axis=0),
                       jnp.concatenate([m1, m2], axis=0))
    c1, c2 = jnp.split(cls, 2, axis=0)
    eps = 1e-8  # matches torch.nn.functional.cosine_similarity
    dot = jnp.sum(c1 * c2, axis=-1)
    n1 = jnp.sqrt(jnp.sum(c1 * c1, axis=-1))
    n2 = jnp.sqrt(jnp.sum(c2 * c2, axis=-1))
    return dot / (jnp.maximum(n1, eps) * jnp.maximum(n2, eps))   # [B]


# ---------------------------------------------------------------------------
# Deterministic parameter init (synthetic — no checkpoint loading)
# Layer weights stacked [L, ...]; matmul operands stored in bf16, the rest f32.
# ---------------------------------------------------------------------------
def init_params(key):
    H, F, L = BERT_HIDDEN_SIZE, FFN_SIZE, NUM_LAYERS
    keys = iter(jax.random.split(key, 32))

    def nrm(shape, std=0.02):
        return std * jax.random.normal(next(keys), shape, jnp.float32)

    # 0/1 head-selector masks [NH, 1, H]
    col_head = jnp.arange(H, dtype=jnp.int32) // HEAD_DIM
    head_mask = (col_head[None, None, :] ==
                 jnp.arange(NUM_HEADS, dtype=jnp.int32)[:, None, None]
                 ).astype(jnp.float32)

    return {
        "word_emb": nrm((VOCAB, H)),
        "pos_emb": nrm((MAX_POS, H)),
        "type_emb": nrm((2, H)),
        "emb_ln_g": jnp.ones((1, H), jnp.float32),
        "emb_ln_b": jnp.zeros((1, H), jnp.float32),
        "head_mask": head_mask,
        # stacked encoder layer parameters (QKV fused along the output dim)
        "wqkv": nrm((L, H, 3 * H)).astype(jnp.bfloat16),
        "bqkv": jnp.zeros((L, 1, 3 * H), jnp.float32),
        "wo": nrm((L, H, H)).astype(jnp.bfloat16),
        "bo": jnp.zeros((L, 1, H), jnp.float32),
        "ln1_g": jnp.ones((L, 1, H), jnp.float32),
        "ln1_b": jnp.zeros((L, 1, H), jnp.float32),
        "w1": nrm((L, H, F)).astype(jnp.bfloat16),
        "b1": jnp.zeros((L, 1, F), jnp.float32),
        "w2": nrm((L, F, H)).astype(jnp.bfloat16),
        "b2": jnp.zeros((L, 1, H), jnp.float32),
        "ln2_g": jnp.ones((L, 1, H), jnp.float32),
        "ln2_b": jnp.zeros((L, 1, H), jnp.float32),
        # task heads
        "sent_w": nrm((H, NUM_SENTIMENT)),
        "sent_b": jnp.zeros((1, NUM_SENTIMENT), jnp.float32),
        "para_w": nrm((2 * H, 1)),
        "para_b": jnp.zeros((1, 1), jnp.float32),
        "sim_w": nrm((2 * H, 1)),   # defined in the module but unused by predict_similarity
        "sim_b": jnp.zeros((1, 1), jnp.float32),
    }


# ---------------------------------------------------------------------------
if __name__ == "__main__":
    key = jax.random.PRNGKey(0)
    pkey, dkey = jax.random.split(key)
    params = init_params(pkey)

    k1, k2 = jax.random.split(dkey)
    ids1 = jax.random.randint(k1, (BATCH, SEQ), 0, VOCAB, dtype=jnp.int32)
    ids2 = jax.random.randint(k2, (BATCH, SEQ), 0, VOCAB, dtype=jnp.int32)
    mask1 = jnp.ones((BATCH, SEQ), jnp.int32).at[:, -2:].set(0)   # some padding
    mask2 = jnp.ones((BATCH, SEQ), jnp.int32)

    sent = predict_sentiment(params, ids1, mask1)
    para = predict_paraphrase(params, ids1, mask1, ids2, mask2)
    sim = predict_similarity(params, ids1, mask1, ids2, mask2)

    jax.block_until_ready((sent, para, sim))
    assert sent.shape == (BATCH, NUM_SENTIMENT)
    assert para.shape == (BATCH, 1)
    assert sim.shape == (BATCH,)
    assert bool(jnp.all(jnp.isfinite(sent))) and bool(jnp.all(jnp.isfinite(para)))
    assert bool(jnp.all(jnp.abs(sim) <= 1.0 + 1e-5))
    print("KERNEL_OK")
</pallas_src>

<mosaic_0001>
module attributes {stable_mosaic.version = 11 : i64} {
  func.func @encoder_kernel(%arg0: memref<16x128xf32, #tpu.memory_space<vmem>>, %arg1: memref<16x16xf32, #tpu.memory_space<vmem>>, %arg2: memref<2x1x128xf32, #tpu.memory_space<vmem>>, %arg3: memref<1x128xf32, #tpu.memory_space<vmem>>, %arg4: memref<1x128xf32, #tpu.memory_space<vmem>>, %arg5: memref<2x128x384xbf16, #tpu.memory_space<vmem>>, %arg6: memref<2x1x384xf32, #tpu.memory_space<vmem>>, %arg7: memref<2x128x128xbf16, #tpu.memory_space<vmem>>, %arg8: memref<2x1x128xf32, #tpu.memory_space<vmem>>, %arg9: memref<2x1x128xf32, #tpu.memory_space<vmem>>, %arg10: memref<2x1x128xf32, #tpu.memory_space<vmem>>, %arg11: memref<2x128x512xbf16, #tpu.memory_space<vmem>>, %arg12: memref<2x1x512xf32, #tpu.memory_space<vmem>>, %arg13: memref<2x512x128xbf16, #tpu.memory_space<vmem>>, %arg14: memref<2x1x128xf32, #tpu.memory_space<vmem>>, %arg15: memref<2x1x128xf32, #tpu.memory_space<vmem>>, %arg16: memref<2x1x128xf32, #tpu.memory_space<vmem>>, %arg17: memref<16x128xf32, #tpu.memory_space<vmem>>) attributes {dimension_semantics = [], scalar_prefetch = 0 : i64, scratch_operands = 0 : i64, tpu.core_type = #tpu.core_type<tc>} {
    %c0 = arith.constant 0 : index
    %c0_0 = arith.constant 0 : index
    %0 = vector.load %arg0[%c0, %c0_0] : memref<16x128xf32, #tpu.memory_space<vmem>>, vector<16x128xf32>
    %c0_1 = arith.constant 0 : index
    %c0_2 = arith.constant 0 : index
    %1 = vector.load %arg3[%c0_1, %c0_2] : memref<1x128xf32, #tpu.memory_space<vmem>>, vector<1x128xf32>
    %c0_3 = arith.constant 0 : index
    %c0_4 = arith.constant 0 : index
    %2 = vector.load %arg4[%c0_3, %c0_4] : memref<1x128xf32, #tpu.memory_space<vmem>>, vector<1x128xf32>
    %cst = arith.constant dense<0.000000e+00> : vector<16xf32>
    %3 = vector.multi_reduction <add>, %0, %cst [1] : vector<16x128xf32> to vector<16xf32>
    %4 = vector.shape_cast %3 : vector<16xf32> to vector<16x1xf32>
    %cst_5 = arith.constant 1.280000e+02 : f32
    %5 = vector.broadcast %cst_5 : f32 to vector<16x1xf32>
    %6 = arith.divf %4, %5 : vector<16x1xf32>
    %7 = vector.broadcast %6 : vector<16x1xf32> to vector<16x128xf32>
    %8 = arith.subf %0, %7 : vector<16x128xf32>
    %9 = arith.mulf %8, %8 : vector<16x128xf32>
    %cst_6 = arith.constant dense<0.000000e+00> : vector<16xf32>
    %10 = vector.multi_reduction <add>, %9, %cst_6 [1] : vector<16x128xf32> to vector<16xf32>
    %11 = vector.shape_cast %10 : vector<16xf32> to vector<16x1xf32>
    %cst_7 = arith.constant 1.280000e+02 : f32
    %12 = vector.broadcast %cst_7 : f32 to vector<16x1xf32>
    %13 = arith.divf %11, %12 : vector<16x1xf32>
    %14 = vector.broadcast %6 : vector<16x1xf32> to vector<16x128xf32>
    %15 = arith.subf %0, %14 : vector<16x128xf32>
    %cst_8 = arith.constant 9.99999996E-13 : f32
    %16 = vector.broadcast %cst_8 : f32 to vector<16x1xf32>
    %17 = arith.addf %13, %16 : vector<16x1xf32>
    %18 = math.rsqrt %17 : vector<16x1xf32>
    %19 = vector.broadcast %18 : vector<16x1xf32> to vector<16x128xf32>
    %20 = arith.mulf %15, %19 : vector<16x128xf32>
    %21 = vector.broadcast %1 : vector<1x128xf32> to vector<16x128xf32>
    %22 = arith.mulf %20, %21 : vector<16x128xf32>
    %23 = vector.broadcast %2 : vector<1x128xf32> to vector<16x128xf32>
    %24 = arith.addf %22, %23 : vector<16x128xf32>
    %c0_9 = arith.constant 0 : index
    %c0_10 = arith.constant 0 : index
    %25 = vector.load %arg1[%c0_9, %c0_10] : memref<16x16xf32, #tpu.memory_space<vmem>>, vector<16x16xf32>
    %26 = arith.truncf %24 : vector<16x128xf32> to vector<16x128xbf16>
    %c0_11 = arith.constant 0 : index
    %c0_12 = arith.constant 0 : index
    %c0_13 = arith.constant 0 : index
    %27 = vector.load %arg5[%c0_11, %c0_12, %c0_13] : memref<2x128x384xbf16, #tpu.memory_space<vmem>>, vector<1x128x384xbf16>
    %28 = vector.shape_cast %27 : vector<1x128x384xbf16> to vector<128x384xbf16>
    %cst_14 = arith.constant dense<0.000000e+00> : vector<16x384xf32>
    %29 = tpu.matmul %26, %28, %cst_14 {dimension_numbers = #tpu.dot_dimension_numbers<[1], [0], [0], [1], [0, 0, 1, 1], [], []>} : vector<16x128xbf16>, vector<128x384xbf16>, vector<16x384xf32> -> vector<16x384xf32>
    %c0_15 = arith.constant 0 : index
    %c0_16 = arith.constant 0 : index
    %c0_17 = arith.constant 0 : index
    %30 = vector.load %arg6[%c0_15, %c0_16, %c0_17] : memref<2x1x384xf32, #tpu.memory_space<vmem>>, vector<1x1x384xf32>
    %31 = vector.shape_cast %30 : vector<1x1x384xf32> to vector<1x384xf32>
    %32 = vector.broadcast %31 : vector<1x384xf32> to vector<16x384xf32>
    %33 = arith.addf %29, %32 : vector<16x384xf32>
    %34 = vector.extract_strided_slice %33 {offsets = [0, 0], sizes = [16, 128], strides = [1, 1]} : vector<16x384xf32> to vector<16x128xf32>
    %35 = vector.extract_strided_slice %33 {offsets = [0, 128], sizes = [16, 128], strides = [1, 1]} : vector<16x384xf32> to vector<16x128xf32>
    %36 = vector.extract_strided_slice %33 {offsets = [0, 256], sizes = [16, 128], strides = [1, 1]} : vector<16x384xf32> to vector<16x128xf32>
    %37 = arith.truncf %35 : vector<16x128xf32> to vector<16x128xbf16>
    %cst_18 = arith.constant 0.000000e+00 : f32
    %38 = vector.broadcast %cst_18 : f32 to vector<16x128xf32>
    %c0_19 = arith.constant 0 : index
    %c0_20 = arith.constant 0 : index
    %c0_21 = arith.constant 0 : index
    %39 = vector.load %arg2[%c0_19, %c0_20, %c0_21] : memref<2x1x128xf32, #tpu.memory_space<vmem>>, vector<1x1x128xf32>
    %40 = vector.shape_cast %39 : vector<1x1x128xf32> to vector<1x128xf32>
    %41 = vector.broadcast %40 : vector<1x128xf32> to vector<16x128xf32>
    %42 = arith.mulf %34, %41 : vector<16x128xf32>
    %43 = arith.truncf %42 : vector<16x128xf32> to vector<16x128xbf16>
    "tpu.trace_start"() <{level = 10 : i32, message = "qd,kd->qk"}> : () -> ()
    %cst_22 = arith.constant dense<0.000000e+00> : vector<16x16xf32>
    %44 = tpu.matmul %43, %37, %cst_22 {dimension_numbers = #tpu.dot_dimension_numbers<[1], [1], [0], [0], [0, 0, 1, 0], [], []>} : vector<16x128xbf16>, vector<16x128xbf16>, vector<16x16xf32> -> vector<16x16xf32>
    "tpu.trace_stop"() : () -> ()
    %cst_23 = arith.constant 1.250000e-01 : f32
    %45 = vector.broadcast %cst_23 : f32 to vector<16x16xf32>
    %46 = arith.mulf %44, %45 : vector<16x16xf32>
    %47 = arith.addf %46, %25 : vector<16x16xf32>
    %cst_24 = arith.constant dense<0xFF800000> : vector<16xf32>
    %48 = vector.multi_reduction <maximumf>, %47, %cst_24 [1] : vector<16x16xf32> to vector<16xf32>
    %49 = vector.shape_cast %48 : vector<16xf32> to vector<16x1xf32>
    %50 = vector.broadcast %49 : vector<16x1xf32> to vector<16x16xf32>
    %51 = arith.subf %47, %50 : vector<16x16xf32>
    %52 = math.exp %51 : vector<16x16xf32>
    %cst_25 = arith.constant dense<0.000000e+00> : vector<16xf32>
    %53 = vector.multi_reduction <add>, %52, %cst_25 [1] : vector<16x16xf32> to vector<16xf32>
    %54 = vector.shape_cast %53 : vector<16xf32> to vector<16x1xf32>
    %55 = vector.broadcast %54 : vector<16x1xf32> to vector<16x16xf32>
    %56 = arith.divf %52, %55 : vector<16x16xf32>
    %57 = vector.broadcast %40 : vector<1x128xf32> to vector<16x128xf32>
    %58 = arith.mulf %36, %57 : vector<16x128xf32>
    %59 = arith.truncf %58 : vector<16x128xf32> to vector<16x128xbf16>
    %60 = arith.truncf %56 : vector<16x16xf32> to vector<16x16xbf16>
    %cst_26 = arith.constant dense<0.000000e+00> : vector<16x128xf32>
    %61 = tpu.matmul %60, %59, %cst_26 {dimension_numbers = #tpu.dot_dimension_numbers<[1], [0], [0], [1], [0, 0, 1, 1], [], []>} : vector<16x16xbf16>, vector<16x128xbf16>, vector<16x128xf32> -> vector<16x128xf32>
    %62 = arith.addf %38, %61 : vector<16x128xf32>
    %c1 = arith.constant 1 : index
    %c0_27 = arith.constant 0 : index
    %c0_28 = arith.constant 0 : index
    %63 = vector.load %arg2[%c1, %c0_27, %c0_28] : memref<2x1x128xf32, #tpu.memory_space<vmem>>, vector<1x1x128xf32>
    %64 = vector.shape_cast %63 : vector<1x1x128xf32> to vector<1x128xf32>
    %65 = vector.broadcast %64 : vector<1x128xf32> to vector<16x128xf32>
    %66 = arith.mulf %34, %65 : vector<16x128xf32>
    %67 = arith.truncf %66 : vector<16x128xf32> to vector<16x128xbf16>
    "tpu.trace_start"() <{level = 10 : i32, message = "qd,kd->qk"}> : () -> ()
    %cst_29 = arith.constant dense<0.000000e+00> : vector<16x16xf32>
    %68 = tpu.matmul %67, %37, %cst_29 {dimension_numbers = #tpu.dot_dimension_numbers<[1], [1], [0], [0], [0, 0, 1, 0], [], []>} : vector<16x128xbf16>, vector<16x128xbf16>, vector<16x16xf32> -> vector<16x16xf32>
    "tpu.trace_stop"() : () -> ()
    %cst_30 = arith.constant 1.250000e-01 : f32
    %69 = vector.broadcast %cst_30 : f32 to vector<16x16xf32>
    %70 = arith.mulf %68, %69 : vector<16x16xf32>
    %71 = arith.addf %70, %25 : vector<16x16xf32>
    %cst_31 = arith.constant dense<0xFF800000> : vector<16xf32>
    %72 = vector.multi_reduction <maximumf>, %71, %cst_31 [1] : vector<16x16xf32> to vector<16xf32>
    %73 = vector.shape_cast %72 : vector<16xf32> to vector<16x1xf32>
    %74 = vector.broadcast %73 : vector<16x1xf32> to vector<16x16xf32>
    %75 = arith.subf %71, %74 : vector<16x16xf32>
    %76 = math.exp %75 : vector<16x16xf32>
    %cst_32 = arith.constant dense<0.000000e+00> : vector<16xf32>
    %77 = vector.multi_reduction <add>, %76, %cst_32 [1] : vector<16x16xf32> to vector<16xf32>
    %78 = vector.shape_cast %77 : vector<16xf32> to vector<16x1xf32>
    %79 = vector.broadcast %78 : vector<16x1xf32> to vector<16x16xf32>
    %80 = arith.divf %76, %79 : vector<16x16xf32>
    %81 = vector.broadcast %64 : vector<1x128xf32> to vector<16x128xf32>
    %82 = arith.mulf %36, %81 : vector<16x128xf32>
    %83 = arith.truncf %82 : vector<16x128xf32> to vector<16x128xbf16>
    %84 = arith.truncf %80 : vector<16x16xf32> to vector<16x16xbf16>
    %cst_33 = arith.constant dense<0.000000e+00> : vector<16x128xf32>
    %85 = tpu.matmul %84, %83, %cst_33 {dimension_numbers = #tpu.dot_dimension_numbers<[1], [0], [0], [1], [0, 0, 1, 1], [], []>} : vector<16x16xbf16>, vector<16x128xbf16>, vector<16x128xf32> -> vector<16x128xf32>
    %86 = arith.addf %62, %85 : vector<16x128xf32>
    %87 = arith.truncf %86 : vector<16x128xf32> to vector<16x128xbf16>
    %c0_34 = arith.constant 0 : index
    %c0_35 = arith.constant 0 : index
    %c0_36 = arith.constant 0 : index
    %88 = vector.load %arg7[%c0_34, %c0_35, %c0_36] : memref<2x128x128xbf16, #tpu.memory_space<vmem>>, vector<1x128x128xbf16>
    %89 = vector.shape_cast %88 : vector<1x128x128xbf16> to vector<128x128xbf16>
    %cst_37 = arith.constant dense<0.000000e+00> : vector<16x128xf32>
    %90 = tpu.matmul %87, %89, %cst_37 {dimension_numbers = #tpu.dot_dimension_numbers<[1], [0], [0], [1], [0, 0, 1, 1], [], []>} : vector<16x128xbf16>, vector<128x128xbf16>, vector<16x128xf32> -> vector<16x128xf32>
    %c0_38 = arith.constant 0 : index
    %c0_39 = arith.constant 0 : index
    %c0_40 = arith.constant 0 : index
    %91 = vector.load %arg8[%c0_38, %c0_39, %c0_40] : memref<2x1x128xf32, #tpu.memory_space<vmem>>, vector<1x1x128xf32>
    %92 = vector.shape_cast %91 : vector<1x1x128xf32> to vector<1x128xf32>
    %93 = vector.broadcast %92 : vector<1x128xf32> to vector<16x128xf32>
    %94 = arith.addf %90, %93 : vector<16x128xf32>
    %95 = arith.addf %24, %94 : vector<16x128xf32>
    %c0_41 = arith.constant 0 : index
    %c0_42 = arith.constant 0 : index
    %c0_43 = arith.constant 0 : index
    %96 = vector.load %arg9[%c0_41, %c0_42, %c0_43] : memref<2x1x128xf32, #tpu.memory_space<vmem>>, vector<1x1x128xf32>
    %97 = vector.shape_cast %96 : vector<1x1x128xf32> to vector<1x128xf32>
    %c0_44 = arith.constant 0 : index
    %c0_45 = arith.constant 0 : index
    %c0_46 = arith.constant 0 : index
    %98 = vector.load %arg10[%c0_44, %c0_45, %c0_46] : memref<2x1x128xf32, #tpu.memory_space<vmem>>, vector<1x1x128xf32>
    %99 = vector.shape_cast %98 : vector<1x1x128xf32> to vector<1x128xf32>
    %cst_47 = arith.constant dense<0.000000e+00> : vector<16xf32>
    %100 = vector.multi_reduction <add>, %95, %cst_47 [1] : vector<16x128xf32> to vector<16xf32>
    %101 = vector.shape_cast %100 : vector<16xf32> to vector<16x1xf32>
    %cst_48 = arith.constant 1.280000e+02 : f32
    %102 = vector.broadcast %cst_48 : f32 to vector<16x1xf32>
    %103 = arith.divf %101, %102 : vector<16x1xf32>
    %104 = vector.broadcast %103 : vector<16x1xf32> to vector<16x128xf32>
    %105 = arith.subf %95, %104 : vector<16x128xf32>
    %106 = arith.mulf %105, %105 : vector<16x128xf32>
    %cst_49 = arith.constant dense<0.000000e+00> : vector<16xf32>
    %107 = vector.multi_reduction <add>, %106, %cst_49 [1] : vector<16x128xf32> to vector<16xf32>
    %108 = vector.shape_cast %107 : vector<16xf32> to vector<16x1xf32>
    %cst_50 = arith.constant 1.280000e+02 : f32
    %109 = vector.broadcast %cst_50 : f32 to vector<16x1xf32>
    %110 = arith.divf %108, %109 : vector<16x1xf32>
    %111 = vector.broadcast %103 : vector<16x1xf32> to vector<16x128xf32>
    %112 = arith.subf %95, %111 : vector<16x128xf32>
    %cst_51 = arith.constant 9.99999996E-13 : f32
    %113 = vector.broadcast %cst_51 : f32 to vector<16x1xf32>
    %114 = arith.addf %110, %113 : vector<16x1xf32>
    %115 = math.rsqrt %114 : vector<16x1xf32>
    %116 = vector.broadcast %115 : vector<16x1xf32> to vector<16x128xf32>
    %117 = arith.mulf %112, %116 : vector<16x128xf32>
    %118 = vector.broadcast %97 : vector<1x128xf32> to vector<16x128xf32>
    %119 = arith.mulf %117, %118 : vector<16x128xf32>
    %120 = vector.broadcast %99 : vector<1x128xf32> to vector<16x128xf32>
    %121 = arith.addf %119, %120 : vector<16x128xf32>
    %122 = arith.truncf %121 : vector<16x128xf32> to vector<16x128xbf16>
    %c0_52 = arith.constant 0 : index
    %c0_53 = arith.constant 0 : index
    %c0_54 = arith.constant 0 : index
    %123 = vector.load %arg11[%c0_52, %c0_53, %c0_54] : memref<2x128x512xbf16, #tpu.memory_space<vmem>>, vector<1x128x512xbf16>
    %124 = vector.shape_cast %123 : vector<1x128x512xbf16> to vector<128x512xbf16>
    %cst_55 = arith.constant dense<0.000000e+00> : vector<16x512xf32>
    %125 = tpu.matmul %122, %124, %cst_55 {dimension_numbers = #tpu.dot_dimension_numbers<[1], [0], [0], [1], [0, 0, 1, 1], [], []>} : vector<16x128xbf16>, vector<128x512xbf16>, vector<16x512xf32> -> vector<16x512xf32>
    %c0_56 = arith.constant 0 : index
    %c0_57 = arith.constant 0 : index
    %c0_58 = arith.constant 0 : index
    %126 = vector.load %arg12[%c0_56, %c0_57, %c0_58] : memref<2x1x512xf32, #tpu.memory_space<vmem>>, vector<1x1x512xf32>
    %127 = vector.shape_cast %126 : vector<1x1x512xf32> to vector<1x512xf32>
    %128 = vector.broadcast %127 : vector<1x512xf32> to vector<16x512xf32>
    %129 = arith.addf %125, %128 : vector<16x512xf32>
    %cst_59 = arith.constant 5.000000e-01 : f32
    %130 = vector.broadcast %cst_59 : f32 to vector<16x512xf32>
    %131 = arith.mulf %130, %129 : vector<16x512xf32>
    %cst_60 = arith.constant 4.471500e-02 : f32
    %132 = vector.broadcast %cst_60 : f32 to vector<16x512xf32>
    %133 = arith.mulf %132, %129 : vector<16x512xf32>
    %134 = arith.mulf %133, %129 : vector<16x512xf32>
    %135 = arith.mulf %134, %129 : vector<16x512xf32>
    %136 = arith.addf %129, %135 : vector<16x512xf32>
    %cst_61 = arith.constant 0.797884583 : f32
    %137 = vector.broadcast %cst_61 : f32 to vector<16x512xf32>
    %138 = arith.mulf %137, %136 : vector<16x512xf32>
    %139 = math.tanh %138 : vector<16x512xf32>
    %cst_62 = arith.constant 1.000000e+00 : f32
    %140 = vector.broadcast %cst_62 : f32 to vector<16x512xf32>
    %141 = arith.addf %140, %139 : vector<16x512xf32>
    %142 = arith.mulf %131, %141 : vector<16x512xf32>
    %143 = arith.truncf %142 : vector<16x512xf32> to vector<16x512xbf16>
    %c0_63 = arith.constant 0 : index
    %c0_64 = arith.constant 0 : index
    %c0_65 = arith.constant 0 : index
    %144 = vector.load %arg13[%c0_63, %c0_64, %c0_65] : memref<2x512x128xbf16, #tpu.memory_space<vmem>>, vector<1x512x128xbf16>
    %145 = vector.shape_cast %144 : vector<1x512x128xbf16> to vector<512x128xbf16>
    %cst_66 = arith.constant dense<0.000000e+00> : vector<16x128xf32>
    %146 = tpu.matmul %143, %145, %cst_66 {dimension_numbers = #tpu.dot_dimension_numbers<[1], [0], [0], [1], [0, 0, 1, 1], [], []>} : vector<16x512xbf16>, vector<512x128xbf16>, vector<16x128xf32> -> vector<16x128xf32>
    %c0_67 = arith.constant 0 : index
    %c0_68 = arith.constant 0 : index
    %c0_69 = arith.constant 0 : index
    %147 = vector.load %arg14[%c0_67, %c0_68, %c0_69] : memref<2x1x128xf32, #tpu.memory_space<vmem>>, vector<1x1x128xf32>
    %148 = vector.shape_cast %147 : vector<1x1x128xf32> to vector<1x128xf32>
    %149 = vector.broadcast %148 : vector<1x128xf32> to vector<16x128xf32>
    %150 = arith.addf %146, %149 : vector<16x128xf32>
    %151 = arith.addf %121, %150 : vector<16x128xf32>
    %c0_70 = arith.constant 0 : index
    %c0_71 = arith.constant 0 : index
    %c0_72 = arith.constant 0 : index
    %152 = vector.load %arg15[%c0_70, %c0_71, %c0_72] : memref<2x1x128xf32, #tpu.memory_space<vmem>>, vector<1x1x128xf32>
    %153 = vector.shape_cast %152 : vector<1x1x128xf32> to vector<1x128xf32>
    %c0_73 = arith.constant 0 : index
    %c0_74 = arith.constant 0 : index
    %c0_75 = arith.constant 0 : index
    %154 = vector.load %arg16[%c0_73, %c0_74, %c0_75] : memref<2x1x128xf32, #tpu.memory_space<vmem>>, vector<1x1x128xf32>
    %155 = vector.shape_cast %154 : vector<1x1x128xf32> to vector<1x128xf32>
    %cst_76 = arith.constant dense<0.000000e+00> : vector<16xf32>
    %156 = vector.multi_reduction <add>, %151, %cst_76 [1] : vector<16x128xf32> to vector<16xf32>
    %157 = vector.shape_cast %156 : vector<16xf32> to vector<16x1xf32>
    %cst_77 = arith.constant 1.280000e+02 : f32
    %158 = vector.broadcast %cst_77 : f32 to vector<16x1xf32>
    %159 = arith.divf %157, %158 : vector<16x1xf32>
    %160 = vector.broadcast %159 : vector<16x1xf32> to vector<16x128xf32>
    %161 = arith.subf %151, %160 : vector<16x128xf32>
    %162 = arith.mulf %161, %161 : vector<16x128xf32>
    %cst_78 = arith.constant dense<0.000000e+00> : vector<16xf32>
    %163 = vector.multi_reduction <add>, %162, %cst_78 [1] : vector<16x128xf32> to vector<16xf32>
    %164 = vector.shape_cast %163 : vector<16xf32> to vector<16x1xf32>
    %cst_79 = arith.constant 1.280000e+02 : f32
    %165 = vector.broadcast %cst_79 : f32 to vector<16x1xf32>
    %166 = arith.divf %164, %165 : vector<16x1xf32>
    %167 = vector.broadcast %159 : vector<16x1xf32> to vector<16x128xf32>
    %168 = arith.subf %151, %167 : vector<16x128xf32>
    %cst_80 = arith.constant 9.99999996E-13 : f32
    %169 = vector.broadcast %cst_80 : f32 to vector<16x1xf32>
    %170 = arith.addf %166, %169 : vector<16x1xf32>
    %171 = math.rsqrt %170 : vector<16x1xf32>
    %172 = vector.broadcast %171 : vector<16x1xf32> to vector<16x128xf32>
    %173 = arith.mulf %168, %172 : vector<16x128xf32>
    %174 = vector.broadcast %153 : vector<1x128xf32> to vector<16x128xf32>
    %175 = arith.mulf %173, %174 : vector<16x128xf32>
    %176 = vector.broadcast %155 : vector<1x128xf32> to vector<16x128xf32>
    %177 = arith.addf %175, %176 : vector<16x128xf32>
    %178 = arith.truncf %177 : vector<16x128xf32> to vector<16x128xbf16>
    %c1_81 = arith.constant 1 : index
    %c0_82 = arith.constant 0 : index
    %c0_83 = arith.constant 0 : index
    %179 = vector.load %arg5[%c1_81, %c0_82, %c0_83] : memref<2x128x384xbf16, #tpu.memory_space<vmem>>, vector<1x128x384xbf16>
    %180 = vector.shape_cast %179 : vector<1x128x384xbf16> to vector<128x384xbf16>
    %cst_84 = arith.constant dense<0.000000e+00> : vector<16x384xf32>
    %181 = tpu.matmul %178, %180, %cst_84 {dimension_numbers = #tpu.dot_dimension_numbers<[1], [0], [0], [1], [0, 0, 1, 1], [], []>} : vector<16x128xbf16>, vector<128x384xbf16>, vector<16x384xf32> -> vector<16x384xf32>
    %c1_85 = arith.constant 1 : index
    %c0_86 = arith.constant 0 : index
    %c0_87 = arith.constant 0 : index
    %182 = vector.load %arg6[%c1_85, %c0_86, %c0_87] : memref<2x1x384xf32, #tpu.memory_space<vmem>>, vector<1x1x384xf32>
    %183 = vector.shape_cast %182 : vector<1x1x384xf32> to vector<1x384xf32>
    %184 = vector.broadcast %183 : vector<1x384xf32> to vector<16x384xf32>
    %185 = arith.addf %181, %184 : vector<16x384xf32>
    %186 = vector.extract_strided_slice %185 {offsets = [0, 0], sizes = [16, 128], strides = [1, 1]} : vector<16x384xf32> to vector<16x128xf32>
    %187 = vector.extract_strided_slice %185 {offsets = [0, 128], sizes = [16, 128], strides = [1, 1]} : vector<16x384xf32> to vector<16x128xf32>
    %188 = vector.extract_strided_slice %185 {offsets = [0, 256], sizes = [16, 128], strides = [1, 1]} : vector<16x384xf32> to vector<16x128xf32>
    %189 = arith.truncf %187 : vector<16x128xf32> to vector<16x128xbf16>
    %cst_88 = arith.constant 0.000000e+00 : f32
    %190 = vector.broadcast %cst_88 : f32 to vector<16x128xf32>
    %c0_89 = arith.constant 0 : index
    %c0_90 = arith.constant 0 : index
    %c0_91 = arith.constant 0 : index
    %191 = vector.load %arg2[%c0_89, %c0_90, %c0_91] : memref<2x1x128xf32, #tpu.memory_space<vmem>>, vector<1x1x128xf32>
    %192 = vector.shape_cast %191 : vector<1x1x128xf32> to vector<1x128xf32>
    %193 = vector.broadcast %192 : vector<1x128xf32> to vector<16x128xf32>
    %194 = arith.mulf %186, %193 : vector<16x128xf32>
    %195 = arith.truncf %194 : vector<16x128xf32> to vector<16x128xbf16>
    "tpu.trace_start"() <{level = 10 : i32, message = "qd,kd->qk"}> : () -> ()
    %cst_92 = arith.constant dense<0.000000e+00> : vector<16x16xf32>
    %196 = tpu.matmul %195, %189, %cst_92 {dimension_numbers = #tpu.dot_dimension_numbers<[1], [1], [0], [0], [0, 0, 1, 0], [], []>} : vector<16x128xbf16>, vector<16x128xbf16>, vector<16x16xf32> -> vector<16x16xf32>
    "tpu.trace_stop"() : () -> ()
    %cst_93 = arith.constant 1.250000e-01 : f32
    %197 = vector.broadcast %cst_93 : f32 to vector<16x16xf32>
    %198 = arith.mulf %196, %197 : vector<16x16xf32>
    %199 = arith.addf %198, %25 : vector<16x16xf32>
    %cst_94 = arith.constant dense<0xFF800000> : vector<16xf32>
    %200 = vector.multi_reduction <maximumf>, %199, %cst_94 [1] : vector<16x16xf32> to vector<16xf32>
    %201 = vector.shape_cast %200 : vector<16xf32> to vector<16x1xf32>
    %202 = vector.broadcast %201 : vector<16x1xf32> to vector<16x16xf32>
    %203 = arith.subf %199, %202 : vector<16x16xf32>
    %204 = math.exp %203 : vector<16x16xf32>
    %cst_95 = arith.constant dense<0.000000e+00> : vector<16xf32>
    %205 = vector.multi_reduction <add>, %204, %cst_95 [1] : vector<16x16xf32> to vector<16xf32>
    %206 = vector.shape_cast %205 : vector<16xf32> to vector<16x1xf32>
    %207 = vector.broadcast %206 : vector<16x1xf32> to vector<16x16xf32>
    %208 = arith.divf %204, %207 : vector<16x16xf32>
    %209 = vector.broadcast %192 : vector<1x128xf32> to vector<16x128xf32>
    %210 = arith.mulf %188, %209 : vector<16x128xf32>
    %211 = arith.truncf %210 : vector<16x128xf32> to vector<16x128xbf16>
    %212 = arith.truncf %208 : vector<16x16xf32> to vector<16x16xbf16>
    %cst_96 = arith.constant dense<0.000000e+00> : vector<16x128xf32>
    %213 = tpu.matmul %212, %211, %cst_96 {dimension_numbers = #tpu.dot_dimension_numbers<[1], [0], [0], [1], [0, 0, 1, 1], [], []>} : vector<16x16xbf16>, vector<16x128xbf16>, vector<16x128xf32> -> vector<16x128xf32>
    %214 = arith.addf %190, %213 : vector<16x128xf32>
    %c1_97 = arith.constant 1 : index
    %c0_98 = arith.constant 0 : index
    %c0_99 = arith.constant 0 : index
    %215 = vector.load %arg2[%c1_97, %c0_98, %c0_99] : memref<2x1x128xf32, #tpu.memory_space<vmem>>, vector<1x1x128xf32>
    %216 = vector.shape_cast %215 : vector<1x1x128xf32> to vector<1x128xf32>
    %217 = vector.broadcast %216 : vector<1x128xf32> to vector<16x128xf32>
    %218 = arith.mulf %186, %217 : vector<16x128xf32>
    %219 = arith.truncf %218 : vector<16x128xf32> to vector<16x128xbf16>
    "tpu.trace_start"() <{level = 10 : i32, message = "qd,kd->qk"}> : () -> ()
    %cst_100 = arith.constant dense<0.000000e+00> : vector<16x16xf32>
    %220 = tpu.matmul %219, %189, %cst_100 {dimension_numbers = #tpu.dot_dimension_numbers<[1], [1], [0], [0], [0, 0, 1, 0], [], []>} : vector<16x128xbf16>, vector<16x128xbf16>, vector<16x16xf32> -> vector<16x16xf32>
    "tpu.trace_stop"() : () -> ()
    %cst_101 = arith.constant 1.250000e-01 : f32
    %221 = vector.broadcast %cst_101 : f32 to vector<16x16xf32>
    %222 = arith.mulf %220, %221 : vector<16x16xf32>
    %223 = arith.addf %222, %25 : vector<16x16xf32>
    %cst_102 = arith.constant dense<0xFF800000> : vector<16xf32>
    %224 = vector.multi_reduction <maximumf>, %223, %cst_102 [1] : vector<16x16xf32> to vector<16xf32>
    %225 = vector.shape_cast %224 : vector<16xf32> to vector<16x1xf32>
    %226 = vector.broadcast %225 : vector<16x1xf32> to vector<16x16xf32>
    %227 = arith.subf %223, %226 : vector<16x16xf32>
    %228 = math.exp %227 : vector<16x16xf32>
    %cst_103 = arith.constant dense<0.000000e+00> : vector<16xf32>
    %229 = vector.multi_reduction <add>, %228, %cst_103 [1] : vector<16x16xf32> to vector<16xf32>
    %230 = vector.shape_cast %229 : vector<16xf32> to vector<16x1xf32>
    %231 = vector.broadcast %230 : vector<16x1xf32> to vector<16x16xf32>
    %232 = arith.divf %228, %231 : vector<16x16xf32>
    %233 = vector.broadcast %216 : vector<1x128xf32> to vector<16x128xf32>
    %234 = arith.mulf %188, %233 : vector<16x128xf32>
    %235 = arith.truncf %234 : vector<16x128xf32> to vector<16x128xbf16>
    %236 = arith.truncf %232 : vector<16x16xf32> to vector<16x16xbf16>
    %cst_104 = arith.constant dense<0.000000e+00> : vector<16x128xf32>
    %237 = tpu.matmul %236, %235, %cst_104 {dimension_numbers = #tpu.dot_dimension_numbers<[1], [0], [0], [1], [0, 0, 1, 1], [], []>} : vector<16x16xbf16>, vector<16x128xbf16>, vector<16x128xf32> -> vector<16x128xf32>
    %238 = arith.addf %214, %237 : vector<16x128xf32>
    %239 = arith.truncf %238 : vector<16x128xf32> to vector<16x128xbf16>
    %c1_105 = arith.constant 1 : index
    %c0_106 = arith.constant 0 : index
    %c0_107 = arith.constant 0 : index
    %240 = vector.load %arg7[%c1_105, %c0_106, %c0_107] : memref<2x128x128xbf16, #tpu.memory_space<vmem>>, vector<1x128x128xbf16>
    %241 = vector.shape_cast %240 : vector<1x128x128xbf16> to vector<128x128xbf16>
    %cst_108 = arith.constant dense<0.000000e+00> : vector<16x128xf32>
    %242 = tpu.matmul %239, %241, %cst_108 {dimension_numbers = #tpu.dot_dimension_numbers<[1], [0], [0], [1], [0, 0, 1, 1], [], []>} : vector<16x128xbf16>, vector<128x128xbf16>, vector<16x128xf32> -> vector<16x128xf32>
    %c1_109 = arith.constant 1 : index
    %c0_110 = arith.constant 0 : index
    %c0_111 = arith.constant 0 : index
    %243 = vector.load %arg8[%c1_109, %c0_110, %c0_111] : memref<2x1x128xf32, #tpu.memory_space<vmem>>, vector<1x1x128xf32>
    %244 = vector.shape_cast %243 : vector<1x1x128xf32> to vector<1x128xf32>
    %245 = vector.broadcast %244 : vector<1x128xf32> to vector<16x128xf32>
    %246 = arith.addf %242, %245 : vector<16x128xf32>
    %247 = arith.addf %177, %246 : vector<16x128xf32>
    %c1_112 = arith.constant 1 : index
    %c0_113 = arith.constant 0 : index
    %c0_114 = arith.constant 0 : index
    %248 = vector.load %arg9[%c1_112, %c0_113, %c0_114] : memref<2x1x128xf32, #tpu.memory_space<vmem>>, vector<1x1x128xf32>
    %249 = vector.shape_cast %248 : vector<1x1x128xf32> to vector<1x128xf32>
    %c1_115 = arith.constant 1 : index
    %c0_116 = arith.constant 0 : index
    %c0_117 = arith.constant 0 : index
    %250 = vector.load %arg10[%c1_115, %c0_116, %c0_117] : memref<2x1x128xf32, #tpu.memory_space<vmem>>, vector<1x1x128xf32>
    %251 = vector.shape_cast %250 : vector<1x1x128xf32> to vector<1x128xf32>
    %cst_118 = arith.constant dense<0.000000e+00> : vector<16xf32>
    %252 = vector.multi_reduction <add>, %247, %cst_118 [1] : vector<16x128xf32> to vector<16xf32>
    %253 = vector.shape_cast %252 : vector<16xf32> to vector<16x1xf32>
    %cst_119 = arith.constant 1.280000e+02 : f32
    %254 = vector.broadcast %cst_119 : f32 to vector<16x1xf32>
    %255 = arith.divf %253, %254 : vector<16x1xf32>
    %256 = vector.broadcast %255 : vector<16x1xf32> to vector<16x128xf32>
    %257 = arith.subf %247, %256 : vector<16x128xf32>
    %258 = arith.mulf %257, %257 : vector<16x128xf32>
    %cst_120 = arith.constant dense<0.000000e+00> : vector<16xf32>
    %259 = vector.multi_reduction <add>, %258, %cst_120 [1] : vector<16x128xf32> to vector<16xf32>
    %260 = vector.shape_cast %259 : vector<16xf32> to vector<16x1xf32>
    %cst_121 = arith.constant 1.280000e+02 : f32
    %261 = vector.broadcast %cst_121 : f32 to vector<16x1xf32>
    %262 = arith.divf %260, %261 : vector<16x1xf32>
    %263 = vector.broadcast %255 : vector<16x1xf32> to vector<16x128xf32>
    %264 = arith.subf %247, %263 : vector<16x128xf32>
    %cst_122 = arith.constant 9.99999996E-13 : f32
    %265 = vector.broadcast %cst_122 : f32 to vector<16x1xf32>
    %266 = arith.addf %262, %265 : vector<16x1xf32>
    %267 = math.rsqrt %266 : vector<16x1xf32>
    %268 = vector.broadcast %267 : vector<16x1xf32> to vector<16x128xf32>
    %269 = arith.mulf %264, %268 : vector<16x128xf32>
    %270 = vector.broadcast %249 : vector<1x128xf32> to vector<16x128xf32>
    %271 = arith.mulf %269, %270 : vector<16x128xf32>
    %272 = vector.broadcast %251 : vector<1x128xf32> to vector<16x128xf32>
    %273 = arith.addf %271, %272 : vector<16x128xf32>
    %274 = arith.truncf %273 : vector<16x128xf32> to vector<16x128xbf16>
    %c1_123 = arith.constant 1 : index
    %c0_124 = arith.constant 0 : index
    %c0_125 = arith.constant 0 : index
    %275 = vector.load %arg11[%c1_123, %c0_124, %c0_125] : memref<2x128x512xbf16, #tpu.memory_space<vmem>>, vector<1x128x512xbf16>
    %276 = vector.shape_cast %275 : vector<1x128x512xbf16> to vector<128x512xbf16>
    %cst_126 = arith.constant dense<0.000000e+00> : vector<16x512xf32>
    %277 = tpu.matmul %274, %276, %cst_126 {dimension_numbers = #tpu.dot_dimension_numbers<[1], [0], [0], [1], [0, 0, 1, 1], [], []>} : vector<16x128xbf16>, vector<128x512xbf16>, vector<16x512xf32> -> vector<16x512xf32>
    %c1_127 = arith.constant 1 : index
    %c0_128 = arith.constant 0 : index
    %c0_129 = arith.constant 0 : index
    %278 = vector.load %arg12[%c1_127, %c0_128, %c0_129] : memref<2x1x512xf32, #tpu.memory_space<vmem>>, vector<1x1x512xf32>
    %279 = vector.shape_cast %278 : vector<1x1x512xf32> to vector<1x512xf32>
    %280 = vector.broadcast %279 : vector<1x512xf32> to vector<16x512xf32>
    %281 = arith.addf %277, %280 : vector<16x512xf32>
    %cst_130 = arith.constant 5.000000e-01 : f32
    %282 = vector.broadcast %cst_130 : f32 to vector<16x512xf32>
    %283 = arith.mulf %282, %281 : vector<16x512xf32>
    %cst_131 = arith.constant 4.471500e-02 : f32
    %284 = vector.broadcast %cst_131 : f32 to vector<16x512xf32>
    %285 = arith.mulf %284, %281 : vector<16x512xf32>
    %286 = arith.mulf %285, %281 : vector<16x512xf32>
    %287 = arith.mulf %286, %281 : vector<16x512xf32>
    %288 = arith.addf %281, %287 : vector<16x512xf32>
    %cst_132 = arith.constant 0.797884583 : f32
    %289 = vector.broadcast %cst_132 : f32 to vector<16x512xf32>
    %290 = arith.mulf %289, %288 : vector<16x512xf32>
    %291 = math.tanh %290 : vector<16x512xf32>
    %cst_133 = arith.constant 1.000000e+00 : f32
    %292 = vector.broadcast %cst_133 : f32 to vector<16x512xf32>
    %293 = arith.addf %292, %291 : vector<16x512xf32>
    %294 = arith.mulf %283, %293 : vector<16x512xf32>
    %295 = arith.truncf %294 : vector<16x512xf32> to vector<16x512xbf16>
    %c1_134 = arith.constant 1 : index
    %c0_135 = arith.constant 0 : index
    %c0_136 = arith.constant 0 : index
    %296 = vector.load %arg13[%c1_134, %c0_135, %c0_136] : memref<2x512x128xbf16, #tpu.memory_space<vmem>>, vector<1x512x128xbf16>
    %297 = vector.shape_cast %296 : vector<1x512x128xbf16> to vector<512x128xbf16>
    %cst_137 = arith.constant dense<0.000000e+00> : vector<16x128xf32>
    %298 = tpu.matmul %295, %297, %cst_137 {dimension_numbers = #tpu.dot_dimension_numbers<[1], [0], [0], [1], [0, 0, 1, 1], [], []>} : vector<16x512xbf16>, vector<512x128xbf16>, vector<16x128xf32> -> vector<16x128xf32>
    %c1_138 = arith.constant 1 : index
    %c0_139 = arith.constant 0 : index
    %c0_140 = arith.constant 0 : index
    %299 = vector.load %arg14[%c1_138, %c0_139, %c0_140] : memref<2x1x128xf32, #tpu.memory_space<vmem>>, vector<1x1x128xf32>
    %300 = vector.shape_cast %299 : vector<1x1x128xf32> to vector<1x128xf32>
    %301 = vector.broadcast %300 : vector<1x128xf32> to vector<16x128xf32>
    %302 = arith.addf %298, %301 : vector<16x128xf32>
    %303 = arith.addf %273, %302 : vector<16x128xf32>
    %c1_141 = arith.constant 1 : index
    %c0_142 = arith.constant 0 : index
    %c0_143 = arith.constant 0 : index
    %304 = vector.load %arg15[%c1_141, %c0_142, %c0_143] : memref<2x1x128xf32, #tpu.memory_space<vmem>>, vector<1x1x128xf32>
    %305 = vector.shape_cast %304 : vector<1x1x128xf32> to vector<1x128xf32>
    %c1_144 = arith.constant 1 : index
    %c0_145 = arith.constant 0 : index
    %c0_146 = arith.constant 0 : index
    %306 = vector.load %arg16[%c1_144, %c0_145, %c0_146] : memref<2x1x128xf32, #tpu.memory_space<vmem>>, vector<1x1x128xf32>
    %307 = vector.shape_cast %306 : vector<1x1x128xf32> to vector<1x128xf32>
    %cst_147 = arith.constant dense<0.000000e+00> : vector<16xf32>
    %308 = vector.multi_reduction <add>, %303, %cst_147 [1] : vector<16x128xf32> to vector<16xf32>
    %309 = vector.shape_cast %308 : vector<16xf32> to vector<16x1xf32>
    %cst_148 = arith.constant 1.280000e+02 : f32
    %310 = vector.broadcast %cst_148 : f32 to vector<16x1xf32>
    %311 = arith.divf %309, %310 : vector<16x1xf32>
    %312 = vector.broadcast %311 : vector<16x1xf32> to vector<16x128xf32>
    %313 = arith.subf %303, %312 : vector<16x128xf32>
    %314 = arith.mulf %313, %313 : vector<16x128xf32>
    %cst_149 = arith.constant dense<0.000000e+00> : vector<16xf32>
    %315 = vector.multi_reduction <add>, %314, %cst_149 [1] : vector<16x128xf32> to vector<16xf32>
    %316 = vector.shape_cast %315 : vector<16xf32> to vector<16x1xf32>
    %cst_150 = arith.constant 1.280000e+02 : f32
    %317 = vector.broadcast %cst_150 : f32 to vector<16x1xf32>
    %318 = arith.divf %316, %317 : vector<16x1xf32>
    %319 = vector.broadcast %311 : vector<16x1xf32> to vector<16x128xf32>
    %320 = arith.subf %303, %319 : vector<16x128xf32>
    %cst_151 = arith.constant 9.99999996E-13 : f32
    %321 = vector.broadcast %cst_151 : f32 to vector<16x1xf32>
    %322 = arith.addf %318, %321 : vector<16x1xf32>
    %323 = math.rsqrt %322 : vector<16x1xf32>
    %324 = vector.broadcast %323 : vector<16x1xf32> to vector<16x128xf32>
    %325 = arith.mulf %320, %324 : vector<16x128xf32>
    %326 = vector.broadcast %305 : vector<1x128xf32> to vector<16x128xf32>
    %327 = arith.mulf %325, %326 : vector<16x128xf32>
    %328 = vector.broadcast %307 : vector<1x128xf32> to vector<16x128xf32>
    %329 = arith.addf %327, %328 : vector<16x128xf32>
    %c0_152 = arith.constant 0 : index
    %c0_153 = arith.constant 0 : index
    %330 = vector.load %arg17[%c0_152, %c0_153] : memref<16x128xf32, #tpu.memory_space<vmem>>, vector<16x128xf32>
    tpu.vector_store %arg17[%c0_152, %c0_153], %329 {strides = array<i32>} : memref<16x128xf32, #tpu.memory_space<vmem>>, vector<16x128xf32>,
    return
  }
}

</mosaic_0001>

<bundles_post_ra>
// kernel: predict_sentiment.1
= control target key start
LH: loop header
LB: loop body
LE: loop exit
PB: predicated region body
PF: predicated region fallthrough
CT: control target
= control target key end

     0   :  { %s4511_s0 = inlined_call_operand.vmem [shape: f32[16,128], index: 0, kind: input, shape index: {}]   ;;  %s4512_s1 = inlined_call_operand.vmem [shape: f32[16,16], index: 1, kind: input, shape index: {}]   ;;  %s4513_s2 = inlined_call_operand.vmem [shape: f32[2,1,128], index: 2, kind: input, shape index: {}]   ;;  %s4514_s3 = inlined_call_operand.vmem [shape: f32[1,128], index: 3, kind: input, shape index: {}]   ;;  %s4515_s4 = inlined_call_operand.vmem [shape: f32[1,128], index: 4, kind: input, shape index: {}]   ;;  %s4516_s5 = inlined_call_operand.hbm [shape: bf16[2,128,384], index: 5, kind: input, shape index: {}]   ;;  %s4517_s6 = inlined_call_operand.vmem [shape: f32[2,1,384], index: 6, kind: input, shape index: {}]   ;;  %s4518_s7 = inlined_call_operand.vmem [shape: bf16[2,128,128], index: 7, kind: input, shape index: {}]   ;;  %s4519_s8 = inlined_call_operand.vmem [shape: f32[2,1,128], index: 8, kind: input, shape index: {}]   ;;  %s4520_s9 = inlined_call_operand.vmem [shape: f32[2,1,128], index: 9, kind: input, shape index: {}]   ;;  %s4521_s10 = inlined_call_operand.vmem [shape: f32[2,1,128], index: 10, kind: input, shape index: {}]   ;;  %s4522_s11 = inlined_call_operand.hbm [shape: bf16[2,128,512], index: 11, kind: input, shape index: {}]   ;;  %s4523_s12 = inlined_call_operand.vmem [shape: f32[2,1,512], index: 12, kind: input, shape index: {}]   ;;  %s4524_s13 = inlined_call_operand.hbm [shape: bf16[2,512,128], index: 13, kind: input, shape index: {}]   ;;  %s4525_s14 = inlined_call_operand.vmem [shape: f32[2,1,128], index: 14, kind: input, shape index: {}]   ;;  %s4526_s15 = inlined_call_operand.vmem [shape: f32[2,1,128], index: 15, kind: input, shape index: {}]   ;;  %s4527_s16 = inlined_call_operand.vmem [shape: f32[2,1,128], index: 16, kind: input, shape index: {}]   ;;  %s4528_s17 = inlined_call_operand.vmem [shape: f32[16,128], index: 17, kind: output, shape index: {}]  }
   0x1   :  { %4531 = sst [smem:[#allocation9_spill]] %s4511_s0 }
   0x2   :  { %4532 = sst [smem:[#allocation10_spill]] %s4512_s1 }
   0x3   :  { %22 = vsyncpa [#allocation3], 0 }
   0x4   :  { %23 = vsyncpa [#allocation5], 0  ;;  %s3953_s24 = smov [#allocation4]   ;;  %s3883_s28 = scalar_lea.hbm %s4522_s11, 8192 }
   0x5   :  { %s61_s25 = sshll.u32 %s3953_s24, 4  ;;  %p3884_p0 = scmp.ne.s32.totalorder %s4522_s11, %s3883_s28  ;;  %s62_s25 = int_to_ptr.vmem [resolvable:$true] %s61_s25 }
   0x6   :  { %p3887_p1 = scmp.lt.u32.totalorder %s3883_s28, %s4522_s11 }
   0x8   :  { %p3889_p2 = pnand %p3887_p1, %p3884_p0 }
   0xa   :  { %3892 = shalt.err (!%p3889_p2)
}
   0xb   :  { %s3893_s19 = scalar_lea.vmem %s62_s25, 8192  ;;  %p3898_p4 = scmp.lt.s32.totalorder %s62_s25, %s62_s25 }
   0xc   :  { %p3894_p3 = scmp.ne.s32.totalorder %s62_s25, %s3893_s19  ;;  %p3899_p5 = scmp.lt.s32.totalorder %s3893_s19, %s3893_s19 }
   0xe   :  { %p3900_p6 = por %p3899_p5, %p3898_p4 }
  0x10   :  { %p3901_p7 = pnand %p3900_p6, %p3894_p3 }
  0x12   :  { %3904 = shalt.err (!%p3901_p7)
}
  0x13   :  { %s3954_s1 = smov 256   ;;  %s3955_s20 = smov 16  }
  0x14   :  { %67 = dma.hbm_to_vmem [thread:$0]  %s4522_s11, 8192, %s62_s25, [#allocation5], %s3954_s1, %s3954_s1, %s3955_s20  }
  0x15   :  { %s3956_s23 = smov [#allocation2]   ;;  %s3905_s28 = scalar_lea.hbm %s4516_s5, 6144 }
  0x16   :  { %s39_s24 = sshll.u32 %s3956_s23, 4  ;;  %p3906_p8 = scmp.ne.s32.totalorder %s4516_s5, %s3905_s28  ;;  %s40_s24 = int_to_ptr.vmem [resolvable:$true] %s39_s24 }
  0x17   :  { %p3909_p9 = scmp.lt.u32.totalorder %s3905_s28, %s4516_s5 }
  0x19   :  { %p3911_p10 = pnand %p3909_p9, %p3906_p8 }
  0x1b   :  { %3914 = shalt.err (!%p3911_p10)
}
  0x1c   :  { %s3915_s19 = scalar_lea.vmem %s40_s24, 6144  ;;  %p3920_p12 = scmp.lt.s32.totalorder %s40_s24, %s40_s24 }
  0x1d   :  { %p3916_p11 = scmp.ne.s32.totalorder %s40_s24, %s3915_s19  ;;  %p3921_p13 = scmp.lt.s32.totalorder %s3915_s19, %s3915_s19 }
  0x1f   :  { %p3922_p0 = por %p3921_p13, %p3920_p12 }
  0x21   :  { %p3923_p1 = pnand %p3922_p0, %p3916_p11 }
  0x23   :  { %3926 = shalt.err (!%p3923_p1)
}
  0x24   :  { %s3957_s11 = smov 192   ;;  %s3958_s25 = smov 12  }
  0x25   :  { %45 = dma.hbm_to_vmem [thread:$0]  %s4516_s5, 6144, %s40_s24, [#allocation3], %s3957_s11, %s3957_s11, %s3958_s25  }
  0x26   :  { %s3959_s21 = smov [#allocation6]   ;;  %s3927_s27 = scalar_lea.hbm %s4524_s13, 8192 }
  0x27   :  { %s75_s22 = sshll.u32 %s3959_s21, 4  ;;  %p3928_p2 = scmp.ne.s32.totalorder %s4524_s13, %s3927_s27  ;;  %s76_s22 = int_to_ptr.vmem [resolvable:$true] %s75_s22 }
  0x28   :  { %p3931_p3 = scmp.lt.u32.totalorder %s3927_s27, %s4524_s13 }
  0x2a   :  { %p3933_p4 = pnand %p3931_p3, %p3928_p2 }
  0x2c   :  { %3936 = shalt.err (!%p3933_p4)
}
  0x2d   :  { %s3937_s18 = scalar_lea.vmem %s76_s22, 8192  ;;  %p3942_p6 = scmp.lt.s32.totalorder %s76_s22, %s76_s22 }
  0x2e   :  { %p3938_p5 = scmp.ne.s32.totalorder %s76_s22, %s3937_s18  ;;  %p3943_p7 = scmp.lt.s32.totalorder %s3937_s18, %s3937_s18 }
  0x30   :  { %p3944_p8 = por %p3943_p7, %p3942_p6 }
  0x32   :  { %p3945_p9 = pnand %p3944_p8, %p3938_p5 }
  0x34   :  { %3948 = shalt.err (!%p3945_p9)
}
  0x35   :  { %s3960_s5 = smov 64   ;;  %s3961_s24 = smov 4  }
  0x36   :  { %81 = dma.hbm_to_vmem [thread:$0]  %s4524_s13, 8192, %s76_s22, [#allocation5], %s3960_s5, %s3960_s5, %s3961_s24  }
  0x37   :  { %3949 = dma.done.wait [#allocation3], 6144  }
  0x38   :  { %3950 = vsyncadd [#allocation3], 4294961152 }
  0x39   :  { %3951 = dma.done.wait [#allocation5], 16384  }
  0x3a   :  { %3952 = vsyncadd [#allocation5], 4294950912  ;;  %s4533_s20 = sld [smem:[#allocation9_spill]]  ;;  %v3557_v2 = vld [vmem:[#allocation2 + $0x4] ss:$12 sps:$4 sm:$0xff]   ;;  %v3962_v4 = vmov 0.0   ;;  %v178_v53 = vlaneseq }
  0x3b   :  { %v3559_v3 = vld [vmem:[#allocation2] ss:$12 sps:$4 sm:$0xff]   ;;  %3409 = vmatprep.subr.bf16.mxu1 %v3962_v4  ;;  %v3560_v5 = vld [vmem:[#allocation2 + $0x8] ss:$12 sps:$4 sm:$0xff]   ;;  %321 = vmatprep.subr.bf16.mxu0 %v3557_v2  ;;  %v3563_v15 = vld [vmem:[#allocation2 + $0x18] ss:$12 sps:$4 sm:$0xff]  }
  0x3c   :  { %v3561_v6 = vld [vmem:[#allocation2 + $0x1c] ss:$12 sps:$4 sm:$0xff]   ;;  %322 = vmatpush1.bf16.msra.mxu0 %v3559_v3  ;;  %3410 = vmatpush3.bf16.msra.mxu1 %v3560_v5  ;;  %v3564_v16 = vld [vmem:[#allocation2 + $0x20] ss:$12 sps:$4 sm:$0xff]   ;;  %v3568_v19 = vld [vmem:[#allocation2 + $0x38] ss:$12 sps:$4 sm:$0xff]  }
  0x3d   :  { %323 = vmatprep.subr.bf16.mxu0 %v3561_v6  ;;  %3411 = vmatprep.subr.bf16.mxu1 %v3962_v4  ;;  %v3565_v17 = vld [vmem:[#allocation2 + $0x34] ss:$12 sps:$4 sm:$0xff]   ;;  %v3567_v18 = vld [vmem:[#allocation2 + $0x30] ss:$12 sps:$4 sm:$0xff]   ;;  %v3569_v20 = vld [vmem:[#allocation2 + $0x4c] ss:$12 sps:$4 sm:$0xff]  }
  0x3e   :  { %v3571_v21 = vld [vmem:[#allocation2 + $0x48] ss:$12 sps:$4 sm:$0xff]   ;;  %v3572_v22 = vld [vmem:[#allocation2 + $0x50] ss:$12 sps:$4 sm:$0xff]   ;;  %v3575_v24 = vld [vmem:[#allocation2 + $0x60] ss:$12 sps:$4 sm:$0xff]  }
  0x3f   :  { %v3573_v23 = vld [vmem:[#allocation2 + $0x64] ss:$12 sps:$4 sm:$0xff]   ;;  %v3576_v25 = vld [vmem:[#allocation2 + $0x68] ss:$12 sps:$4 sm:$0xff]   ;;  %v3580_v28 = vld [vmem:[#allocation2 + $0x80] ss:$12 sps:$4 sm:$0xff]  }
  0x40   :  { %v98_v0 = vld [vmem:[%s4533_s20] sm:$0xff]  ;;  %v99_v1 = vld [vmem:[%s4533_s20 + $0x8] sm:$0xff]  ;;  %324 = vmatpush1.bf16.msra.mxu0 %v3563_v15  ;;  %3412 = vmatpush3.bf16.msra.mxu1 %v3564_v16  ;;  %v3963_v30 = vmov 0   ;;  %vm3964_vm0 = vmmov 0   ;;  %v3583_v31 = vld [vmem:[#allocation2 + $0x90] ss:$12 sps:$4 sm:$0xff]  }
  0x41   :  { %102 = vadd.xlane.f32.xlu0 %v98_v0  ;;  %3413 = vmatprep.subr.bf16.mxu1 %v3962_v4  ;;  %v3577_v26 = vld [vmem:[#allocation2 + $0x7c] ss:$12 sps:$4 sm:$0xff]   ;;  %v3579_v27 = vld [vmem:[#allocation2 + $0x78] ss:$12 sps:$4 sm:$0xff]   ;;  %v3581_v29 = vld [vmem:[#allocation2 + $0x94] ss:$12 sps:$4 sm:$0xff]  }
  0x42   :  { %325 = vmatprep.subr.bf16.mxu0 %v3565_v17  ;;  %353 = vmatprep.mubr.bf16.mxu0 %v3963_v30  ;;  %v3584_v32 = vld [vmem:[#allocation2 + $0x98] ss:$12 sps:$4 sm:$0xff]   ;;  %v3587_v34 = vld [vmem:[#allocation2 + $0xa8] ss:$12 sps:$4 sm:$0xff]   ;;  %v3588_v35 = vld [vmem:[#allocation2 + $0xb0] ss:$12 sps:$4 sm:$0xff]  }
  0x43   :  { %3425 = vmatprep.mubr.msk.bf16.mxu1 %vm3964_vm0, %v3962_v4  ;;  %v3585_v33 = vld [vmem:[#allocation2 + $0xac] ss:$12 sps:$4 sm:$0xff]   ;;  %v3029_v44 = vld [vmem:[%s4514_s3] ss:$0 sm:$0xff]  ;;  %v4136_v54 = vshrl.u32 %v178_v53, 7  ;;  %s4534_s24 = sld [smem:[#allocation10_spill]] }
  0x44   :  { %326 = vmatpush1.bf16.msra.mxu0 %v3567_v18  ;;  %3414 = vmatpush3.bf16.msra.mxu1 %v3568_v19  ;;  %v3030_v48 = vld [vmem:[%s4515_s4] ss:$0 sm:$0xff]  ;;  %v3057_v6 = vld [vmem:[%s4513_s2 + $0x1] ss:$0 sm:$0xff]  ;;  %vm461_vm1 = vcmask 130048  }
  0x45   :  { %104 = vadd.xlane.f32.xlu0 %v99_v1  ;;  %3415 = vmatprep.subr.bf16.mxu1 %v3962_v4  ;;  %v4139_v55 = vsub.s32 0, %v4136_v54  ;;  %v4142_v56 = vsub.s32 2, %v4136_v54  ;;  %v176_v57 = vld [vmem:[%s4517_s6] sm:$0x7]  ;;  %v4150_v60 = vsub.s32 1, %v4136_v54 }
  0x46   :  { %327 = vmatprep.subr.bf16.mxu0 %v3569_v20  ;;  %v3055_v62 = vld [vmem:[%s4513_s2] ss:$0 sm:$0xff] }
  0x47   :  { %v181_v58 = vrot.slane %v176_v57, %v4139_v55  ;;  %v189_v59 = vrot.slane %v176_v57, %v4142_v56  ;;  %v185_v2 = vrot.slane %v176_v57, %v4150_v60 }
  0x48   :  { %328 = vmatpush1.bf16.msra.mxu0 %v3571_v21  ;;  %3416 = vmatpush3.bf16.msra.mxu1 %v3572_v22 }
  0x49   :  { %3417 = vmatprep.subr.bf16.mxu1 %v3962_v4  ;;  %329 = vmatprep.subr.bf16.mxu0 %v3573_v23 }
  0x4c   :  { %330 = vmatpush1.bf16.msra.mxu0 %v3575_v24  ;;  %3418 = vmatpush3.bf16.msra.mxu1 %v3576_v25 }
  0x4d   :  { %331 = vmatprep.subr.bf16.mxu0 %v3577_v26  ;;  %3419 = vmatprep.subr.bf16.mxu1 %v3962_v4 }
  0x50   :  { %332 = vmatpush1.bf16.msra.mxu0 %v3579_v27  ;;  %3420 = vmatpush3.bf16.msra.mxu1 %v3580_v28 }
  0x51   :  { %333 = vmatprep.subr.bf16.mxu0 %v3581_v29  ;;  %3421 = vmatprep.subr.bf16.mxu1 %v3962_v4 }
  0x54   :  { %334 = vmatpush1.bf16.msra.mxu0 %v3583_v31  ;;  %3422 = vmatpush3.bf16.msra.mxu1 %v3584_v32 }
  0x55   :  { %335 = vmatprep.subr.bf16.mxu0 %v3585_v33  ;;  %3423 = vmatprep.subr.bf16.mxu1 %v3962_v4 }
  0x58   :  { %336 = vmatpush1.bf16.msra.mxu0 %v3587_v34  ;;  %3424 = vmatpush3.bf16.msra.mxu1 %v3588_v35 }
  0x59   :  { %3429 = vmatprep.subr.bf16.mxu0 %v3962_v4  ;;  %3453 = vmatprep.subr.bf16.mxu1 %v3962_v4 }
  0xce   :  { %v103_v7 = vpop.xlane.xlu0 %102 }
  0xcf   :  { %v107_v8 = vmul.f32 0.0078125, %v103_v7 }
  0xd1   :  { %v4099_v9 = vsub.f32 %v98_v0, %v107_v8 }
  0xd2   :  { %v105_v10 = vpop.xlane.xlu0 %104 }
  0xd3   :  { %v108_v11 = vmul.f32 0.0078125, %v105_v10  ;;  %v111_v12 = vmul.f32 %v4099_v9, %v4099_v9 }
  0xd5   :  { %v4103_v13 = vsub.f32 %v99_v1, %v108_v11  ;;  %113 = vadd.xlane.f32.xlu1 %v111_v12 }
  0xd7   :  { %v112_v14 = vmul.f32 %v4103_v13, %v4103_v13 }
  0xd9   :  { %115 = vadd.xlane.f32.xlu1 %v112_v14 }
 0x162   :  { %v114_v36 = vpop.xlane.xlu1 %113 }
 0x163   :  { %v117_v37 = vmul.f32 0.0078125, %v114_v36 }
 0x165   :  { %v119_v38 = vadd.f32 1e-12, %v117_v37 }
 0x166   :  { %v116_v39 = vpop.xlane.xlu1 %115 }
 0x167   :  { %3797 = vrsqrt.f32 %v119_v38  ;;  %v118_v40 = vmul.f32 0.0078125, %v116_v39  ;;  %v141_v38 = vld [vmem:[%s4534_s24] sm:$0xff] }
 0x169   :  { %v120_v41 = vadd.f32 1e-12, %v118_v40 }
 0x16b   :  { %3799 = vrsqrt.f32 %v120_v41 }
 0x171   :  { %v3798_v42 = vpop.eup %3797 }
 0x172   :  { %v123_v43 = vmul.f32 %v3798_v42, %v4099_v9 }
 0x174   :  { %v131_v47 = vmul.f32 %v3029_v44, %v123_v43  ;;  %v142_v43 = vld [vmem:[%s4534_s24 + $0x8] sm:$0xff] }
 0x175   :  { %v3800_v45 = vpop.eup %3799 }
 0x176   :  { %v124_v46 = vmul.f32 %v3800_v45, %v4103_v13  ;;  %v4126_v50 = vadd.f32 %v3030_v48, %v131_v47 }
 0x178   :  { %v132_v49 = vmul.f32 %v3029_v44, %v124_v46 }
 0x17a   :  { %v4128_v51 = vadd.f32 %v3030_v48, %v132_v49 }
 0x17c   :  { %v143_v52 = vpack.c.bf16 %v4128_v51, %v4126_v50 }
 0x17e   :  { %354 = vmatmul.mubr.bf16.vlgmr.msra.gmra.mrb[0].mxu0 %v143_v52  ;;  %3426 = vmatmul.mubr.bf16.vlgmr.msra.gmra.mrb[0].mxu1 %v143_v52 }
 0x17f   :  { %3431 = vmatprep.mubr.msk.bf16.mxu0 %vm3964_vm0, %v3962_v4  ;;  %3469 = vmatprep.mubr.msk.bf16.mxu1 %vm3964_vm0, %v3962_v4 }
 0x251   :  { %v355_v61 = vpop.f32.mrb[0].mxu0  ;;  %v398_v63 = vpop.f32.mrb[0].mxu1 }
 0x252   :  { %v356_v0 = vadd.f32 %v355_v61, %v181_v58  ;;  %v399_v1 = vadd.f32 %v398_v63, %v189_v59  ;;  %v357_v3 = vpop.f32.mrb[1].mxu0  ;;  %v3427_v5 = vpop.f32.mrb[1].mxu1 }
 0x253   :  { %v359_v7 = vpop.f32.mrb[2].mxu0  ;;  %v401_v8 = vpop.f32.mrb[2].mxu1  ;;  %v358_v18 = vadd.f32 %v357_v3, %v185_v2 }
 0x254   :  { %v4159_v9 = vmul.f32 %v3055_v62, %v399_v1  ;;  %v361_v10 = vpop.f32.mrb[3].mxu0  ;;  %v3428_v11 = vpop.f32.mrb[3].mxu1  ;;  %v360_v12 = vadd.f32 %v359_v7, %v181_v58  ;;  %v402_v13 = vadd.f32 %v401_v8, %v189_v59  ;;  %v413_v15 = vmul.f32 %v3055_v62, %v356_v0 }
 0x255   :  { %v362_v14 = vadd.f32 %v361_v10, %v185_v2  ;;  %v496_v16 = vmul.f32 %v3057_v6, %v356_v0  ;;  %v566_v17 = vmul.f32 %v3057_v6, %v399_v1 }
 0x256   :  { %v414_v19 = vmul.f32 %v3055_v62, %v360_v12  ;;  %v497_v20 = vmul.f32 %v3057_v6, %v360_v12  ;;  %v4161_v21 = vmul.f32 %v3055_v62, %v402_v13  ;;  %v567_v22 = vmul.f32 %v3057_v6, %v402_v13 }
 0x257   :  { %v405_v23 = vpack.c.bf16 %v362_v14, %v358_v18  ;;  %v3592_v18 = vld [vmem:[%s4518_s7 + $0x18] sm:$0xff]  }
 0x258   :  { %v415_v24 = vpack.c.bf16 %v414_v19, %v413_v15  ;;  %v498_v25 = vpack.c.bf16 %v497_v20, %v496_v16  ;;  %v486_v26 = vpack.c.bf16 %v4161_v21, %v4159_v9  ;;  %v568_v27 = vpack.c.bf16 %v567_v22, %v566_v17  ;;  %v3589_v15 = vld [vmem:[%s4518_s7] sm:$0xff]   ;;  %v3590_v16 = vld [vmem:[%s4518_s7 + $0x8] sm:$0xff]   ;;  %v3591_v17 = vld [vmem:[%s4518_s7 + $0x10] sm:$0xff]  }
 0x259   :  { %3430 = vmatpush3.bf16.xpose.msra.mxu0 %v405_v23  ;;  %3454 = vmatpush3.bf16.msra.mxu1 %v3589_v15  ;;  %v3593_v19 = vld [vmem:[%s4518_s7 + $0x20] sm:$0xff]   ;;  %v3594_v20 = vld [vmem:[%s4518_s7 + $0x28] sm:$0xff]   ;;  %v3595_v22 = vld [vmem:[%s4518_s7 + $0x30] sm:$0xff]  }
 0x25a   :  { %3435 = vmatprep.subr.bf16.mxu0 %v3962_v4  ;;  %3455 = vmatprep.subr.bf16.mxu1 %v3962_v4  ;;  %v3615_v15 = vld [vmem:[#allocation4 + $0x60] ss:$16 sps:$4 sm:$0xff]  }
 0x25d   :  { %3456 = vmatpush3.bf16.msra.mxu1 %v3590_v16  ;;  %v3618_v16 = vld [vmem:[#allocation4 + $0x68] ss:$16 sps:$4 sm:$0xff]  }
 0x25e   :  { %3457 = vmatprep.subr.bf16.mxu1 %v3962_v4 }
 0x260   :  { %3432 = vmatmul.mubr.bf16.vlgmr.msra.gmra.mrb[4].mxu0 %v415_v24 }
 0x261   :  { %3436 = vmatpush3.bf16.xpose.msra.mxu0 %v405_v23  ;;  %3437 = vmatprep.mubr.msk.bf16.mxu0 %vm3964_vm0, %v3962_v4 }
 0x262   :  { %3441 = vmatprep.subr.bf16.mxu0 %v3962_v4  ;;  %3458 = vmatpush3.bf16.msra.mxu1 %v3591_v17  ;;  %v3623_v17 = vld [vmem:[#allocation4 + $0x84] ss:$16 sps:$4 sm:$0xff]  }
 0x263   :  { %3459 = vmatprep.subr.bf16.mxu1 %v3962_v4 }
 0x266   :  { %3460 = vmatpush3.bf16.msra.mxu1 %v3592_v18  ;;  %v3626_v18 = vld [vmem:[#allocation4 + $0x8c] ss:$16 sps:$4 sm:$0xff]  }
 0x267   :  { %3461 = vmatprep.subr.bf16.mxu1 %v3962_v4 }
 0x268   :  { %3438 = vmatmul.mubr.bf16.vlgmr.msra.gmra.mrb[8].mxu0 %v498_v25 }
 0x269   :  { %3442 = vmatpush3.bf16.msra.mxu0 %v568_v27  ;;  %3443 = vmatprep.mubr.msk.bf16.mxu0 %vm3964_vm0, %v3962_v4 }
 0x26a   :  { %3447 = vmatprep.subr.bf16.mxu0 %v3962_v4  ;;  %3462 = vmatpush3.bf16.msra.mxu1 %v3593_v19  ;;  %v3621_v19 = vld [vmem:[#allocation4 + $0x80] ss:$16 sps:$4 sm:$0xff]  }
 0x26b   :  { %3463 = vmatprep.subr.bf16.mxu1 %v3962_v4 }
 0x26e   :  { %3464 = vmatpush3.bf16.msra.mxu1 %v3594_v20  ;;  %v3624_v20 = vld [vmem:[#allocation4 + $0x88] ss:$16 sps:$4 sm:$0xff]  }
 0x26f   :  { %3465 = vmatprep.subr.bf16.mxu1 %v3962_v4 }
 0x272   :  { %3466 = vmatpush3.bf16.msra.mxu1 %v3595_v22  ;;  %v3629_v22 = vld [vmem:[#allocation4 + $0xa4] ss:$16 sps:$4 sm:$0xff]  }
 0x273   :  { %3467 = vmatprep.subr.bf16.mxu1 %v3962_v4 }
 0x333   :  { %v450_v28 = vpop.f32.mrb[4].mxu0 }
 0x334   :  { %v3433_v29 = vpop.f32.mrb[5].mxu0  ;;  %v457_v34 = vmul.f32 0.125, %v450_v28 }
 0x335   :  { %v453_v31 = vpop.f32.mrb[6].mxu0 }
 0x336   :  { %v3434_v32 = vpop.f32.mrb[7].mxu0  ;;  %v458_v39 = vmul.f32 0.125, %v453_v31  ;;  %v459_v46 = vadd.f32 %v457_v34, %v141_v38 }
 0x338   :  { %v460_v48 = vadd.f32 %v458_v39, %v142_v43  ;;  %v462_v49 = vsel %vm461_vm1, %v459_v46, -inf  ;;  %v3596_v39 = vld [vmem:[%s4518_s7 + $0x38] sm:$0xff]  }
 0x339   :  { %3468 = vmatpush3.bf16.msra.mxu1 %v3596_v39 }
 0x33a   :  { %v465_v52 = vsel %vm461_vm1, %v460_v48, -inf }
 0x33b   :  { %v533_v33 = vpop.f32.mrb[8].mxu0 }
 0x33c   :  { %v540_v35 = vmul.f32 0.125, %v533_v33  ;;  %v3439_v36 = vpop.f32.mrb[9].mxu0 }
 0x33d   :  { %v536_v37 = vpop.f32.mrb[10].mxu0 }
 0x33e   :  { %v541_v40 = vmul.f32 0.125, %v536_v37  ;;  %v3440_v41 = vpop.f32.mrb[11].mxu0  ;;  %v542_v42 = vadd.f32 %v540_v35, %v141_v38 }
 0x340   :  { %v544_v44 = vsel %vm461_vm1, %v542_v42, -inf  ;;  %v543_v45 = vadd.f32 %v541_v40, %v142_v43 }
 0x341   :  { %545 = vmax.xlane.f32.xlu0 %v544_v44 }
 0x342   :  { %v547_v47 = vsel %vm461_vm1, %v543_v45, -inf }
 0x343   :  { %548 = vmax.xlane.f32.xlu1 %v547_v47 }
 0x345   :  { %463 = vmax.xlane.f32.xlu0 %v462_v49 }
 0x347   :  { %466 = vmax.xlane.f32.xlu1 %v465_v52 }
 0x3ce   :  { %v546_v53 = vpop.xlane.xlu0 %545 }
 0x3cf   :  { %v550_v57 = vsub.f32 %v542_v42, %v546_v53  ;;  %v3060_v42 = vld [vmem:[%s4519_s8] ss:$0 sm:$0xff] }
 0x3d0   :  { %v549_v58 = vpop.xlane.xlu1 %548  ;;  %v3597_v53 = vld [vmem:[#allocation4] ss:$16 sps:$4 sm:$0xff]  }
 0x3d1   :  { %v552_v59 = vmul.f32 1.442695, %v550_v57  ;;  %v551_v61 = vsub.f32 %v543_v45, %v549_v58  ;;  %v3599_v57 = vld [vmem:[#allocation4 + $0x4] ss:$16 sps:$4 sm:$0xff]   ;;  %v3600_v58 = vld [vmem:[#allocation4 + $0x8] ss:$16 sps:$4 sm:$0xff]  }
 0x3d2   :  { %v464_v62 = vpop.xlane.xlu0 %463 }
 0x3d3   :  { %3801 = vpow2.f32 %v552_v59  ;;  %v554_v63 = vmul.f32 1.442695, %v551_v61  ;;  %v468_v0 = vsub.f32 %v459_v46, %v464_v62  ;;  %v3602_v59 = vld [vmem:[#allocation4 + $0xc] ss:$16 sps:$4 sm:$0xff]   ;;  %v3605_v61 = vld [vmem:[#allocation4 + $0x24] ss:$16 sps:$4 sm:$0xff]  }
 0x3d4   :  { %v467_v1 = vpop.xlane.xlu1 %466  ;;  %v3608_v62 = vld [vmem:[#allocation4 + $0x2c] ss:$16 sps:$4 sm:$0xff]   ;;  %1071 = vmatprep.subr.bf16.mxu1 %v3602_v59 }
 0x3d5   :  { %3803 = vpow2.f32 %v554_v63  ;;  %v470_v2 = vmul.f32 1.442695, %v468_v0  ;;  %v469_v3 = vsub.f32 %v460_v48, %v467_v1  ;;  %v3603_v63 = vld [vmem:[#allocation4 + $0x20] ss:$16 sps:$4 sm:$0xff]   ;;  %v3606_v0 = vld [vmem:[#allocation4 + $0x28] ss:$16 sps:$4 sm:$0xff]  }
 0x3d6   :  { %v3649_v59 = vld [vmem:[#allocation6 + $0x48] sm:$0xff]  }
 0x3d7   :  { %3805 = vpow2.f32 %v470_v2  ;;  %v472_v5 = vmul.f32 1.442695, %v469_v3 }
 0x3d9   :  { %3807 = vpow2.f32 %v472_v5 }
 0x3dd   :  { %v3802_v6 = vpop.eup %3801 }
 0x3de   :  { %v556_v7 = vsel %vm461_vm1, %v3802_v6, 0.0 }
 0x3df   :  { %v3804_v8 = vpop.eup %3803  ;;  %557 = vadd.xlane.f32.xlu0 %v556_v7 }
 0x3e0   :  { %v559_v10 = vsel %vm461_vm1, %v3804_v8, 0.0 }
 0x3e1   :  { %v3806_v11 = vpop.eup %3805  ;;  %560 = vadd.xlane.f32.xlu1 %v559_v10  ;;  %v3614_v10 = vld [vmem:[#allocation4 + $0x4c] ss:$16 sps:$4 sm:$0xff]  }
 0x3e2   :  { %v474_v12 = vsel %vm461_vm1, %v3806_v11, 0.0 }
 0x3e3   :  { %v3808_v13 = vpop.eup %3807  ;;  %475 = vadd.xlane.f32.xlu0 %v474_v12  ;;  %v3612_v12 = vld [vmem:[#allocation4 + $0x48] ss:$16 sps:$4 sm:$0xff]  }
 0x3e4   :  { %v477_v14 = vsel %vm461_vm1, %v3808_v13, 0.0 }
 0x3e5   :  { %478 = vadd.xlane.f32.xlu1 %v477_v14  ;;  %v3620_v14 = vld [vmem:[#allocation4 + $0x6c] ss:$16 sps:$4 sm:$0xff]  }
 0x46c   :  { %v558_v23 = vpop.xlane.xlu0 %557 }
 0x46d   :  { %3809 = vrcp.f32 %v558_v23  ;;  %v3632_v23 = vld [vmem:[#allocation4 + $0xac] ss:$16 sps:$4 sm:$0xff]  }
 0x46e   :  { %v561_v24 = vpop.xlane.xlu1 %560 }
 0x46f   :  { %3811 = vrcp.f32 %v561_v24  ;;  %v3627_v24 = vld [vmem:[#allocation4 + $0xa0] ss:$16 sps:$4 sm:$0xff]  }
 0x470   :  { %v476_v27 = vpop.xlane.xlu0 %475 }
 0x472   :  { %v479_v25 = vpop.xlane.xlu1 %478 }
 0x473   :  { %3813 = vrcp.f32 %v479_v25  ;;  %v3630_v25 = vld [vmem:[#allocation4 + $0xa8] ss:$16 sps:$4 sm:$0xff]  }
 0x474   :  { %3815 = vrcp.f32 %v476_v27  ;;  %v3635_v27 = vld [vmem:[#allocation4 + $0xc4] ss:$16 sps:$4 sm:$0xff]  }
 0x477   :  { %v3810_v28 = vpop.eup %3809 }
 0x478   :  { %v563_v31 = vmul.f32 %v3810_v28, %v3802_v6  ;;  %v3638_v28 = vld [vmem:[#allocation4 + $0xcc] ss:$16 sps:$4 sm:$0xff]  }
 0x479   :  { %v3812_v29 = vpop.eup %3811 }
 0x47a   :  { %v565_v32 = vmul.f32 %v3812_v29, %v3804_v8  ;;  %v3611_v8 = vld [vmem:[#allocation4 + $0x44] ss:$16 sps:$4 sm:$0xff]   ;;  %v3633_v29 = vld [vmem:[#allocation4 + $0xc0] ss:$16 sps:$4 sm:$0xff]  }
 0x47c   :  { %v569_v33 = vpack.c.bf16 %v565_v32, %v563_v31  ;;  %v3636_v31 = vld [vmem:[#allocation4 + $0xc8] ss:$16 sps:$4 sm:$0xff]   ;;  %v3641_v32 = vld [vmem:[#allocation4 + $0xe4] ss:$16 sps:$4 sm:$0xff]  }
 0x47d   :  { %v3814_v34 = vpop.eup %3813 }
 0x47e   :  { %3444 = vmatmul.mubr.msk.bf16.vlgmr.msra.gmra.mrb[12].mxu0 %vm461_vm1, %v569_v33  ;;  %v3816_v35 = vpop.eup %3815  ;;  %v483_v36 = vmul.f32 %v3814_v34, %v3808_v13  ;;  %v3617_v13 = vld [vmem:[#allocation4 + $0x64] ss:$16 sps:$4 sm:$0xff]   ;;  %v3644_v33 = vld [vmem:[#allocation4 + $0xec] ss:$16 sps:$4 sm:$0xff]   ;;  %v3639_v34 = vld [vmem:[#allocation4 + $0xe0] ss:$16 sps:$4 sm:$0xff]  }
 0x47f   :  { %3448 = vmatpush3.bf16.msra.mxu0 %v486_v26  ;;  %3449 = vmatprep.mubr.msk.bf16.mxu0 %vm3964_vm0, %v3962_v4  ;;  %v481_v37 = vmul.f32 %v3816_v35, %v3806_v11  ;;  %v3609_v11 = vld [vmem:[#allocation4 + $0x40] ss:$16 sps:$4 sm:$0xff]   ;;  %v3642_v35 = vld [vmem:[#allocation4 + $0xe8] ss:$16 sps:$4 sm:$0xff]  }
 0x480   :  { %1028 = vmatprep.subr.bf16.mxu0 %v3599_v57  ;;  %v3647_v57 = vld [vmem:[#allocation6] sm:$0xff]  }
 0x481   :  { %v487_v38 = vpack.c.bf16 %v483_v36, %v481_v37 }
 0x48a   :  { %3450 = vmatmul.mubr.msk.bf16.vlgmr.msra.gmra.mrb[12].mxu0 %vm461_vm1, %v487_v38 }
 0x48b   :  { %1060 = vmatprep.mubr.bf16.mxu0 %v3963_v30  ;;  %1029 = vmatpush1.bf16.msra.mxu0 %v3597_v53  ;;  %v3646_v53 = vld [vmem:[#allocation6 + $0xc0] sm:$0xff]  }
 0x48c   :  { %1030 = vmatprep.subr.bf16.mxu0 %v3605_v61  ;;  %v3650_v61 = vld [vmem:[#allocation6 + $0xc8] sm:$0xff]  }
 0x48f   :  { %1031 = vmatpush1.bf16.msra.mxu0 %v3603_v63  ;;  %v3652_v63 = vld [vmem:[#allocation6 + $0x88] sm:$0xff]  }
 0x490   :  { %1032 = vmatprep.subr.bf16.mxu0 %v3611_v8  ;;  %v3662_v8 = vld [vmem:[#allocation6 + $0xe0] sm:$0xff]  }
 0x493   :  { %1033 = vmatpush1.bf16.msra.mxu0 %v3609_v11  ;;  %v3664_v11 = vld [vmem:[#allocation6 + $0xa0] sm:$0xff]  }
 0x494   :  { %1034 = vmatprep.subr.bf16.mxu0 %v3617_v13  ;;  %v3666_v13 = vld [vmem:[#allocation6 + $0xe8] sm:$0xff]  }
 0x497   :  { %1035 = vmatpush1.bf16.msra.mxu0 %v3615_v15  ;;  %v3668_v15 = vld [vmem:[#allocation6 + $0xa8] sm:$0xff]  }
 0x498   :  { %1036 = vmatprep.subr.bf16.mxu0 %v3623_v17  ;;  %v3670_v17 = vld [vmem:[#allocation6 + $0xf0] sm:$0xff]  }
 0x49b   :  { %1037 = vmatpush1.bf16.msra.mxu0 %v3621_v19  ;;  %v3672_v19 = vld [vmem:[#allocation6 + $0xb0] sm:$0xff]  }
 0x49c   :  { %1038 = vmatprep.subr.bf16.mxu0 %v3629_v22  ;;  %v3674_v22 = vld [vmem:[#allocation6 + $0xf8] sm:$0xff]  }
 0x49f   :  { %1039 = vmatpush1.bf16.msra.mxu0 %v3627_v24  ;;  %v3676_v24 = vld [vmem:[#allocation6 + $0xb8] sm:$0xff]  }
 0x4a0   :  { %1040 = vmatprep.subr.bf16.mxu0 %v3635_v27  ;;  %v862_v27 = vsub.s32 3, %v4136_v54 }
 0x4a3   :  { %1041 = vmatpush1.bf16.msra.mxu0 %v3633_v29 }
 0x4a4   :  { %1042 = vmatprep.subr.bf16.mxu0 %v3641_v32 }
 0x4a7   :  { %1043 = vmatpush1.bf16.msra.mxu0 %v3639_v34 }
 0x55d   :  { %v651_v40 = vpop.f32.mrb[12].mxu0 }
 0x55e   :  { %v3451_v9 = vpop.f32.mrb[13].mxu0 }
 0x55f   :  { %v654_v21 = vpop.f32.mrb[14].mxu0 }
 0x560   :  { %v658_v26 = vpack.c.bf16 %v654_v21, %v651_v40  ;;  %v3452_v41 = vpop.f32.mrb[15].mxu0 }
 0x562   :  { %3470 = vmatmul.mubr.bf16.vlgmr.msra.gmra.mrb[4].mxu1 %v658_v26  ;;  %v3069_v26 = vld [vmem:[%s4520_s9] ss:$0 sm:$0xff] }
 0x563   :  { %1103 = vmatprep.mubr.bf16.mxu1 %v3963_v30  ;;  %1072 = vmatpush1.bf16.msra.mxu1 %v3600_v58  ;;  %v3648_v58 = vld [vmem:[#allocation6 + $0x80] sm:$0xff]  }
 0x564   :  { %1073 = vmatprep.subr.bf16.mxu1 %v3608_v62  ;;  %v3651_v62 = vld [vmem:[#allocation6 + $0x8] sm:$0xff]  }
 0x567   :  { %1074 = vmatpush1.bf16.msra.mxu1 %v3606_v0  ;;  %v3653_v0 = vld [vmem:[#allocation6 + $0x50] sm:$0xff]  }
 0x568   :  { %1075 = vmatprep.subr.bf16.mxu1 %v3614_v10  ;;  %v3663_v10 = vld [vmem:[#allocation6 + $0x20] sm:$0xff]  }
 0x56b   :  { %1076 = vmatpush1.bf16.msra.mxu1 %v3612_v12  ;;  %v3665_v12 = vld [vmem:[#allocation6 + $0x68] sm:$0xff]  }
 0x56c   :  { %1077 = vmatprep.subr.bf16.mxu1 %v3620_v14  ;;  %v3667_v14 = vld [vmem:[#allocation6 + $0x28] sm:$0xff]  }
 0x56f   :  { %1078 = vmatpush1.bf16.msra.mxu1 %v3618_v16  ;;  %v3669_v16 = vld [vmem:[#allocation6 + $0x70] sm:$0xff]  }
 0x570   :  { %1079 = vmatprep.subr.bf16.mxu1 %v3626_v18  ;;  %v3671_v18 = vld [vmem:[#allocation6 + $0x30] sm:$0xff]  }
 0x573   :  { %1080 = vmatpush1.bf16.msra.mxu1 %v3624_v20  ;;  %v3673_v20 = vld [vmem:[#allocation6 + $0x78] sm:$0xff]  }
 0x574   :  { %1081 = vmatprep.subr.bf16.mxu1 %v3632_v23  ;;  %v3675_v23 = vld [vmem:[#allocation6 + $0x38] sm:$0xff]  }
 0x577   :  { %1082 = vmatpush1.bf16.msra.mxu1 %v3630_v25  ;;  %v846_v25 = vld [vmem:[%s4523_s12] sm:$0xf] }
 0x578   :  { %1083 = vmatprep.subr.bf16.mxu1 %v3638_v28  ;;  %v851_v28 = vrot.slane %v846_v25, %v4139_v55  ;;  %v859_v29 = vrot.slane %v846_v25, %v4142_v56  ;;  %v863_v32 = vrot.slane %v846_v25, %v862_v27 }
 0x57b   :  { %1084 = vmatpush1.bf16.msra.mxu1 %v3636_v31  ;;  %v855_v31 = vrot.slane %v846_v25, %v4150_v60 }
 0x57c   :  { %1085 = vmatprep.subr.bf16.mxu1 %v3644_v33 }
 0x57f   :  { %1086 = vmatpush1.bf16.msra.mxu1 %v3642_v35 }
 0x580   :  { %3317 = vmatprep.subr.bf16.mxu1 %v3646_v53 }
 0x635   :  { %v764_v43 = vpop.f32.mrb[4].mxu1 }
 0x636   :  { %v765_v44 = vadd.f32 %v3060_v42, %v764_v43  ;;  %v3471_v45 = vpop.f32.mrb[5].mxu1 }
 0x637   :  { %v767_v46 = vpop.f32.mrb[6].mxu1  ;;  %v3070_v45 = vld [vmem:[%s4521_s10] ss:$0 sm:$0xff] }
 0x638   :  { %v768_v47 = vadd.f32 %v3060_v42, %v767_v46  ;;  %v3472_v48 = vpop.f32.mrb[7].mxu1  ;;  %v771_v49 = vadd.f32 %v765_v44, %v4126_v50 }
 0x63a   :  { %775 = vadd.xlane.f32.xlu0 %v771_v49  ;;  %v772_v52 = vadd.f32 %v768_v47, %v4128_v51 }
 0x63c   :  { %777 = vadd.xlane.f32.xlu1 %v772_v52 }
 0x6c7   :  { %v776_v50 = vpop.xlane.xlu0 %775 }
 0x6c8   :  { %v779_v1 = vmul.f32 0.0078125, %v776_v50  ;;  %v3654_v50 = vld [vmem:[#allocation6 + $0xd0] sm:$0xff]  }
 0x6c9   :  { %v778_v51 = vpop.xlane.xlu1 %777 }
 0x6ca   :  { %v4231_v2 = vsub.f32 %v771_v49, %v779_v1  ;;  %v780_v3 = vmul.f32 0.0078125, %v778_v51  ;;  %v3655_v1 = vld [vmem:[#allocation6 + $0x10] sm:$0xff]  }
 0x6cb   :  { %v3656_v51 = vld [vmem:[#allocation6 + $0x90] sm:$0xff]  }
 0x6cc   :  { %v4233_v5 = vsub.f32 %v772_v52, %v780_v3  ;;  %v783_v6 = vmul.f32 %v4231_v2, %v4231_v2  ;;  %v3645_v52 = vld [vmem:[#allocation6 + $0x40] sm:$0xff]   ;;  %v3658_v3 = vld [vmem:[#allocation6 + $0xd8] sm:$0xff]  }
 0x6cd   :  { %3295 = vmatprep.subr.bf16.mxu0 %v3645_v52 }
 0x6ce   :  { %785 = vadd.xlane.f32.xlu0 %v783_v6  ;;  %v784_v7 = vmul.f32 %v4233_v5, %v4233_v5  ;;  %v3660_v6 = vld [vmem:[#allocation6 + $0x98] sm:$0xff]  }
 0x6d0   :  { %787 = vadd.xlane.f32.xlu1 %v784_v7  ;;  %v3661_v7 = vld [vmem:[#allocation6 + $0x60] sm:$0xff]  }
 0x75b   :  { %v786_v36 = vpop.xlane.xlu0 %785 }
 0x75c   :  { %v789_v37 = vmul.f32 0.0078125, %v786_v36 }
 0x75d   :  { %v788_v38 = vpop.xlane.xlu1 %787 }
 0x75e   :  { %v791_v39 = vadd.f32 1e-12, %v789_v37  ;;  %v790_v40 = vmul.f32 0.0078125, %v788_v38 }
 0x760   :  { %3817 = vrsqrt.f32 %v791_v39  ;;  %v792_v9 = vadd.f32 1e-12, %v790_v40 }
 0x762   :  { %3819 = vrsqrt.f32 %v792_v9 }
 0x76a   :  { %v3818_v21 = vpop.eup %3817 }
 0x76b   :  { %v795_v41 = vmul.f32 %v3818_v21, %v4231_v2  ;;  %v3657_v2 = vld [vmem:[#allocation6 + $0x58] sm:$0xff]  }
 0x76c   :  { %v3820_v42 = vpop.eup %3819 }
 0x76d   :  { %v796_v43 = vmul.f32 %v3820_v42, %v4233_v5  ;;  %v803_v44 = vmul.f32 %v3069_v26, %v795_v41  ;;  %v3659_v5 = vld [vmem:[#allocation6 + $0x18] sm:$0xff]  }
 0x76f   :  { %v804_v46 = vmul.f32 %v3069_v26, %v796_v43  ;;  %v4247_v47 = vadd.f32 %v3070_v45, %v803_v44 }
 0x771   :  { %v4249_v48 = vadd.f32 %v3070_v45, %v804_v46 }
 0x773   :  { %v813_v49 = vpack.c.bf16 %v4249_v48, %v4247_v47 }
 0x775   :  { %1061 = vmatmul.mubr.bf16.vlgmr.msra.gmra.mrb[16].mxu0 %v813_v49  ;;  %1104 = vmatmul.mubr.bf16.vlgmr.msra.gmra.mrb[8].mxu1 %v813_v49 }
 0x776   :  { %3296 = vmatpush3.bf16.msra.mxu0 %v3647_v57  ;;  %3318 = vmatpush3.bf16.msra.mxu1 %v3648_v58 }
 0x777   :  { %3297 = vmatprep.subr.bf16.mxu0 %v3649_v59  ;;  %3319 = vmatprep.subr.bf16.mxu1 %v3650_v61 }
 0x77a   :  { %3298 = vmatpush3.bf16.msra.mxu0 %v3651_v62  ;;  %3320 = vmatpush3.bf16.msra.mxu1 %v3652_v63 }
 0x77b   :  { %3299 = vmatprep.subr.bf16.mxu0 %v3653_v0  ;;  %3321 = vmatprep.subr.bf16.mxu1 %v3654_v50 }
 0x77e   :  { %3300 = vmatpush3.bf16.msra.mxu0 %v3655_v1  ;;  %3322 = vmatpush3.bf16.msra.mxu1 %v3656_v51 }
 0x77f   :  { %3301 = vmatprep.subr.bf16.mxu0 %v3657_v2  ;;  %3323 = vmatprep.subr.bf16.mxu1 %v3658_v3 }
 0x782   :  { %3302 = vmatpush3.bf16.msra.mxu0 %v3659_v5  ;;  %3324 = vmatpush3.bf16.msra.mxu1 %v3660_v6 }
 0x783   :  { %3303 = vmatprep.subr.bf16.mxu0 %v3661_v7  ;;  %3325 = vmatprep.subr.bf16.mxu1 %v3662_v8 }
 0x786   :  { %3304 = vmatpush3.bf16.msra.mxu0 %v3663_v10  ;;  %3326 = vmatpush3.bf16.msra.mxu1 %v3664_v11 }
 0x787   :  { %3305 = vmatprep.subr.bf16.mxu0 %v3665_v12  ;;  %3327 = vmatprep.subr.bf16.mxu1 %v3666_v13 }
 0x78a   :  { %3306 = vmatpush3.bf16.msra.mxu0 %v3667_v14  ;;  %3328 = vmatpush3.bf16.msra.mxu1 %v3668_v15 }
 0x78b   :  { %3307 = vmatprep.subr.bf16.mxu0 %v3669_v16  ;;  %3329 = vmatprep.subr.bf16.mxu1 %v3670_v17 }
 0x78e   :  { %3308 = vmatpush3.bf16.msra.mxu0 %v3671_v18  ;;  %3330 = vmatpush3.bf16.msra.mxu1 %v3672_v19 }
 0x78f   :  { %3309 = vmatprep.subr.bf16.mxu0 %v3673_v20  ;;  %3331 = vmatprep.subr.bf16.mxu1 %v3674_v22 }
 0x792   :  { %3310 = vmatpush3.bf16.msra.mxu0 %v3675_v23  ;;  %3332 = vmatpush3.bf16.msra.mxu1 %v3676_v24 }
 0x793   :  { %3473 = vmatprep.subr.bf16.mxu1 %v3962_v4 }
 0x848   :  { %v1062_v33 = vpop.f32.mrb[16].mxu0  ;;  %v1105_v34 = vpop.f32.mrb[8].mxu1 }
 0x849   :  { %v4263_v35 = vadd.f32 %v1062_v33, %v851_v28  ;;  %v4265_v36 = vadd.f32 %v1105_v34, %v859_v29  ;;  %v1064_v37 = vpop.f32.mrb[17].mxu0  ;;  %v1107_v38 = vpop.f32.mrb[9].mxu1 }
 0x84a   :  { %v4267_v39 = vadd.f32 %v1064_v37, %v855_v31  ;;  %v4269_v40 = vadd.f32 %v1107_v38, %v863_v32  ;;  %v1066_v9 = vpop.f32.mrb[18].mxu0  ;;  %v1109_v21 = vpop.f32.mrb[10].mxu1 }
 0x84b   :  { %v1122_v26 = vmul.f32 0.044715, %v4263_v35  ;;  %v1124_v41 = vmul.f32 0.044715, %v4265_v36  ;;  %v1067_v42 = vadd.f32 %v1066_v9, %v851_v28  ;;  %v1110_v43 = vadd.f32 %v1109_v21, %v859_v29  ;;  %v1068_v44 = vpop.f32.mrb[19].mxu0  ;;  %v1111_v45 = vpop.f32.mrb[11].mxu1 }
 0x84c   :  { %v1123_v46 = vmul.f32 0.044715, %v4267_v39  ;;  %v1125_v49 = vmul.f32 0.044715, %v4269_v40  ;;  %v4275_v52 = vadd.f32 %v1068_v44, %v855_v31  ;;  %v4277_v53 = vadd.f32 %v1111_v45, %v863_v32 }
 0x84d   :  { %v1130_v57 = vmul.f32 %v1122_v26, %v4263_v35  ;;  %v1132_v58 = vmul.f32 %v1124_v41, %v4265_v36  ;;  %v1126_v59 = vmul.f32 0.044715, %v1067_v42  ;;  %v1128_v61 = vmul.f32 0.044715, %v1110_v43 }
 0x84e   :  { %v1131_v62 = vmul.f32 %v1123_v46, %v4267_v39  ;;  %v1133_v63 = vmul.f32 %v1125_v49, %v4269_v40  ;;  %v1127_v0 = vmul.f32 0.044715, %v4275_v52  ;;  %v1129_v50 = vmul.f32 0.044715, %v4277_v53 }
 0x84f   :  { %v1138_v1 = vmul.f32 %v1130_v57, %v4263_v35  ;;  %v1140_v51 = vmul.f32 %v1132_v58, %v4265_v36  ;;  %v1134_v2 = vmul.f32 %v1126_v59, %v1067_v42  ;;  %v1136_v3 = vmul.f32 %v1128_v61, %v1110_v43 }
 0x850   :  { %v1139_v5 = vmul.f32 %v1131_v62, %v4267_v39  ;;  %v1141_v6 = vmul.f32 %v1133_v63, %v4269_v40  ;;  %v1135_v7 = vmul.f32 %v1127_v0, %v4275_v52  ;;  %v1137_v8 = vmul.f32 %v1129_v50, %v4277_v53 }
 0x851   :  { %v1146_v10 = vadd.f32 %v1138_v1, %v4263_v35  ;;  %v1148_v11 = vadd.f32 %v1140_v51, %v4265_v36  ;;  %v1142_v12 = vmul.f32 %v1134_v2, %v1067_v42  ;;  %v1144_v13 = vmul.f32 %v1136_v3, %v1110_v43 }
 0x852   :  { %v1143_v14 = vmul.f32 %v1135_v7, %v4275_v52  ;;  %v1145_v15 = vmul.f32 %v1137_v8, %v4277_v53  ;;  %v1147_v20 = vadd.f32 %v1139_v5, %v4267_v39  ;;  %v1149_v25 = vadd.f32 %v1141_v6, %v4269_v40 }
 0x853   :  { %v1154_v16 = vmul.f32 0.7978846, %v1146_v10  ;;  %v1156_v17 = vmul.f32 0.7978846, %v1148_v11  ;;  %v1150_v18 = vadd.f32 %v1142_v12, %v1067_v42  ;;  %v1152_v19 = vadd.f32 %v1144_v13, %v1110_v43 }
 0x854   :  { %v1151_v22 = vadd.f32 %v1143_v14, %v4275_v52  ;;  %v1155_v28 = vmul.f32 0.7978846, %v1147_v20  ;;  %v1153_v31 = vadd.f32 %v1145_v15, %v4277_v53  ;;  %v1157_v32 = vmul.f32 0.7978846, %v1149_v25 }
 0x855   :  { %3821 = vtanh.f32 %v1154_v16  ;;  %v1158_v23 = vmul.f32 0.7978846, %v1150_v18  ;;  %v1160_v24 = vmul.f32 0.7978846, %v1152_v19  ;;  %v1114_v41 = vmul.f32 0.5, %v4263_v35 }
 0x856   :  { %3823 = vtanh.f32 %v1156_v17  ;;  %v1159_v29 = vmul.f32 0.7978846, %v1151_v22  ;;  %v1161_v33 = vmul.f32 0.7978846, %v1153_v31  ;;  %v1118_v44 = vmul.f32 0.5, %v1067_v42 }
 0x857   :  { %3825 = vtanh.f32 %v1158_v23  ;;  %v1116_v49 = vmul.f32 0.5, %v4265_v36  ;;  %v1120_v57 = vmul.f32 0.5, %v1110_v43  ;;  %v1115_v61 = vmul.f32 0.5, %v4267_v39 }
 0x858   :  { %3827 = vtanh.f32 %v1160_v24  ;;  %v1119_v1 = vmul.f32 0.5, %v4275_v52  ;;  %v1117_v42 = vmul.f32 0.5, %v4269_v40  ;;  %v1121_v5 = vmul.f32 0.5, %v4277_v53  ;;  %v3103_v52 = vld [vmem:[%s4525_s14] ss:$0 sm:$0xff] }
 0x859   :  { %3829 = vtanh.f32 %v1155_v28 }
 0x85a   :  { %3831 = vtanh.f32 %v1159_v29 }
 0x85b   :  { %3833 = vtanh.f32 %v1157_v32 }
 0x85c   :  { %3835 = vtanh.f32 %v1161_v33 }
 0x85f   :  { %v3822_v34 = vpop.eup %3821 }
 0x860   :  { %v3824_v37 = vpop.eup %3823  ;;  %v1170_v38 = vadd.f32 1.0, %v3822_v34  ;;  %v3677_v34 = vld [vmem:[#allocation2 + $0xc0] ss:$12 sps:$4 sm:$0xff]  }
 0x861   :  { %v3826_v9 = vpop.eup %3825  ;;  %v1172_v21 = vadd.f32 1.0, %v3824_v37  ;;  %v3679_v37 = vld [vmem:[#allocation2 + $0xc4] ss:$12 sps:$4 sm:$0xff]  }
 0x862   :  { %v3828_v26 = vpop.eup %3827  ;;  %v1174_v45 = vadd.f32 1.0, %v3826_v9  ;;  %v1178_v63 = vmul.f32 %v1170_v38, %v1114_v41  ;;  %v3680_v38 = vld [vmem:[#allocation2 + $0xc8] ss:$12 sps:$4 sm:$0xff]   ;;  %1757 = vmatprep.subr.bf16.mxu0 %v3679_v37 }
 0x863   :  { %v3830_v46 = vpop.eup %3829  ;;  %v1176_v58 = vadd.f32 1.0, %v3828_v26  ;;  %v1180_v2 = vmul.f32 %v1172_v21, %v1116_v49  ;;  %v3683_v9 = vld [vmem:[#allocation2 + $0xdc] ss:$12 sps:$4 sm:$0xff]   ;;  %v3684_v21 = vld [vmem:[#allocation2 + $0xe0] ss:$12 sps:$4 sm:$0xff]  }
 0x864   :  { %v3832_v59 = vpop.eup %3831  ;;  %v1171_v62 = vadd.f32 1.0, %v3830_v46  ;;  %v1182_v0 = vmul.f32 %v1174_v45, %v1118_v44  ;;  %v3681_v26 = vld [vmem:[#allocation2 + $0xd8] ss:$12 sps:$4 sm:$0xff]  }
 0x865   :  { %v3834_v50 = vpop.eup %3833  ;;  %v1175_v51 = vadd.f32 1.0, %v3832_v59  ;;  %v1184_v3 = vmul.f32 %v1176_v58, %v1120_v57  ;;  %v3687_v58 = vld [vmem:[#allocation2 + $0xf4] ss:$12 sps:$4 sm:$0xff]   ;;  %v3685_v59 = vld [vmem:[#allocation2 + $0xf0] ss:$12 sps:$4 sm:$0xff]  }
 0x866   :  { %v3836_v35 = vpop.eup %3835  ;;  %v1173_v36 = vadd.f32 1.0, %v3834_v50  ;;  %v1186_v43 = vpack.c.bf16 %v1182_v0, %v1178_v63  ;;  %v1179_v6 = vmul.f32 %v1171_v62, %v1115_v61  ;;  %v3688_v61 = vld [vmem:[#allocation2 + $0xf8] ss:$12 sps:$4 sm:$0xff]   ;;  %v3689_v63 = vld [vmem:[#allocation2 + $0x108] ss:$12 sps:$4 sm:$0xff]  }
 0x867   :  { %v1183_v7 = vmul.f32 %v1175_v51, %v1119_v1  ;;  %v1177_v8 = vadd.f32 1.0, %v3836_v35  ;;  %v1188_v39 = vpack.c.bf16 %v1184_v3, %v1180_v2  ;;  %v3691_v62 = vld [vmem:[#allocation2 + $0x10c] ss:$12 sps:$4 sm:$0xff]   ;;  %v3692_v0 = vld [vmem:[#allocation2 + $0x110] ss:$12 sps:$4 sm:$0xff]  }
 0x868   :  { %v1181_v11 = vmul.f32 %v1173_v36, %v1117_v42  ;;  %v3693_v50 = vld [vmem:[#allocation2 + $0x120] ss:$12 sps:$4 sm:$0xff]   ;;  %v3695_v1 = vld [vmem:[#allocation2 + $0x124] ss:$12 sps:$4 sm:$0xff]   ;;  %v3696_v51 = vld [vmem:[#allocation2 + $0x128] ss:$12 sps:$4 sm:$0xff]  }
 0x869   :  { %v1187_v10 = vpack.c.bf16 %v1183_v7, %v1179_v6  ;;  %v1185_v12 = vmul.f32 %v1177_v8, %v1121_v5  ;;  %v3699_v2 = vld [vmem:[#allocation2 + $0x13c] ss:$12 sps:$4 sm:$0xff]   ;;  %v3697_v3 = vld [vmem:[#allocation2 + $0x138] ss:$12 sps:$4 sm:$0xff]   ;;  %v3700_v35 = vld [vmem:[#allocation2 + $0x140] ss:$12 sps:$4 sm:$0xff]  }
 0x86a   :  { %v3703_v42 = vld [vmem:[#allocation2 + $0x154] ss:$12 sps:$4 sm:$0xff]   ;;  %v3701_v5 = vld [vmem:[#allocation2 + $0x150] ss:$12 sps:$4 sm:$0xff]   ;;  %v3704_v36 = vld [vmem:[#allocation2 + $0x158] ss:$12 sps:$4 sm:$0xff]  }
 0x86b   :  { %1485 = vmatprep.mubr.bf16.mxu0 %v1187_v10  ;;  %v1189_v13 = vpack.c.bf16 %v1185_v12, %v1181_v11  ;;  %v3705_v6 = vld [vmem:[#allocation2 + $0x168] ss:$12 sps:$4 sm:$0xff]   ;;  %v3708_v7 = vld [vmem:[#allocation2 + $0x170] ss:$12 sps:$4 sm:$0xff]  }
 0x86c   :  { %1486 = vmatmul.mubr.bf16.vlgmr.msra.gmra.mrb[20].mxu0 %v1186_v43  ;;  %v3707_v43 = vld [vmem:[#allocation2 + $0x16c] ss:$12 sps:$4 sm:$0xff]  }
 0x86d   :  { %1526 = vmatprep.mubr.bf16.mxu1 %v1189_v13  ;;  %1789 = vmatprep.mubr.bf16.mxu0 %v3963_v30 }
 0x86e   :  { %1527 = vmatmul.mubr.bf16.vlgmr.msra.gmra.mrb[12].mxu1 %v1188_v39  ;;  %1758 = vmatpush1.bf16.msra.mxu0 %v3677_v34 }
 0x86f   :  { %3489 = vmatprep.mubr.msk.bf16.mxu1 %vm3964_vm0, %v3962_v4  ;;  %3474 = vmatpush3.bf16.msra.mxu1 %v3680_v38 }
 0x870   :  { %3475 = vmatprep.subr.bf16.mxu1 %v3962_v4  ;;  %1759 = vmatprep.subr.bf16.mxu0 %v3683_v9  ;;  %v3165_v9 = vld [vmem:[%s4513_s2 + $0x1] ss:$0 sm:$0xff] }
 0x872   :  { %1760 = vmatpush1.bf16.msra.mxu0 %v3681_v26 }
 0x873   :  { %3476 = vmatpush3.bf16.msra.mxu1 %v3684_v21  ;;  %1761 = vmatprep.subr.bf16.mxu0 %v3687_v58 }
 0x874   :  { %3477 = vmatprep.subr.bf16.mxu1 %v3962_v4 }
 0x876   :  { %1762 = vmatpush1.bf16.msra.mxu0 %v3685_v59 }
 0x877   :  { %3478 = vmatpush3.bf16.msra.mxu1 %v3688_v61  ;;  %1763 = vmatprep.subr.bf16.mxu0 %v3691_v62 }
 0x878   :  { %3479 = vmatprep.subr.bf16.mxu1 %v3962_v4 }
 0x87a   :  { %1764 = vmatpush1.bf16.msra.mxu0 %v3689_v63 }
 0x87b   :  { %3480 = vmatpush3.bf16.msra.mxu1 %v3692_v0  ;;  %1765 = vmatprep.subr.bf16.mxu0 %v3695_v1 }
 0x87c   :  { %3481 = vmatprep.subr.bf16.mxu1 %v3962_v4 }
 0x87e   :  { %1766 = vmatpush1.bf16.msra.mxu0 %v3693_v50 }
 0x87f   :  { %3482 = vmatpush3.bf16.msra.mxu1 %v3696_v51  ;;  %1767 = vmatprep.subr.bf16.mxu0 %v3699_v2 }
 0x880   :  { %3483 = vmatprep.subr.bf16.mxu1 %v3962_v4 }
 0x882   :  { %1768 = vmatpush1.bf16.msra.mxu0 %v3697_v3 }
 0x883   :  { %3484 = vmatpush3.bf16.msra.mxu1 %v3700_v35  ;;  %1769 = vmatprep.subr.bf16.mxu0 %v3703_v42 }
 0x884   :  { %3485 = vmatprep.subr.bf16.mxu1 %v3962_v4 }
 0x886   :  { %1770 = vmatpush1.bf16.msra.mxu0 %v3701_v5 }
 0x887   :  { %3486 = vmatpush3.bf16.msra.mxu1 %v3704_v36  ;;  %1771 = vmatprep.subr.bf16.mxu0 %v3707_v43 }
 0x888   :  { %3487 = vmatprep.subr.bf16.mxu1 %v3962_v4 }
 0x88a   :  { %1772 = vmatpush1.bf16.msra.mxu0 %v3705_v6 }
 0x88b   :  { %3488 = vmatpush3.bf16.msra.mxu1 %v3708_v7  ;;  %3493 = vmatprep.subr.bf16.mxu0 %v3962_v4 }
 0x88c   :  { %3517 = vmatprep.subr.bf16.mxu1 %v3962_v4 }
 0x93f   :  { %v3311_v40 = vpop.f32.mrb[20].mxu0 }
 0x940   :  { %v3312_v53 = vpop.f32.mrb[21].mxu0 }
 0x941   :  { %v3333_v14 = vpop.f32.mrb[12].mxu1  ;;  %v3313_v15 = vadd.f32 %v3312_v53, %v3311_v40  ;;  %v3314_v16 = vpop.f32.mrb[22].mxu0 }
 0x942   :  { %v3334_v17 = vpop.f32.mrb[13].mxu1  ;;  %v3315_v18 = vpop.f32.mrb[23].mxu0 }
 0x943   :  { %v1488_v19 = vadd.f32 %v3313_v15, %v3103_v52  ;;  %v3335_v20 = vadd.f32 %v3334_v17, %v3333_v14  ;;  %v3336_v22 = vpop.f32.mrb[14].mxu1  ;;  %v3316_v23 = vadd.f32 %v3315_v18, %v3314_v16  ;;  %v3137_v17 = vld [vmem:[%s4527_s16] ss:$0 sm:$0xff] }
 0x944   :  { %v3337_v24 = vpop.f32.mrb[15].mxu1 }
 0x945   :  { %v1529_v25 = vadd.f32 %v3335_v20, %v1488_v19  ;;  %v1491_v28 = vadd.f32 %v3316_v23, %v3103_v52  ;;  %v3338_v29 = vadd.f32 %v3337_v24, %v3336_v22  ;;  %v3136_v52 = vld [vmem:[%s4526_s15] ss:$0 sm:$0xff]  ;;  %v3138_v23 = vld [vmem:[%s4517_s6 + $0x3] sm:$0x7] }
 0x946   :  { %v1617_v24 = vrot.slane %v3138_v23, %v4139_v55  ;;  %v1621_v34 = vrot.slane %v3138_v23, %v4150_v60 }
 0x947   :  { %v1532_v31 = vadd.f32 %v3338_v29, %v1491_v28  ;;  %v1535_v32 = vadd.f32 %v1529_v25, %v4247_v47  ;;  %v1625_v25 = vrot.slane %v3138_v23, %v4142_v56  ;;  %v3163_v29 = vld [vmem:[%s4513_s2] ss:$0 sm:$0xff] }
 0x949   :  { %1539 = vadd.xlane.f32.xlu0 %v1535_v32  ;;  %v1536_v33 = vadd.f32 %v1532_v31, %v4249_v48 }
 0x94b   :  { %1541 = vadd.xlane.f32.xlu1 %v1536_v33 }
 0x9d6   :  { %v1540_v47 = vpop.xlane.xlu0 %1539 }
 0x9d7   :  { %v1543_v41 = vmul.f32 0.0078125, %v1540_v47 }
 0x9d8   :  { %v1542_v48 = vpop.xlane.xlu1 %1541 }
 0x9d9   :  { %v1545_v44 = vsub.f32 %v1535_v32, %v1543_v41  ;;  %v1544_v45 = vmul.f32 0.0078125, %v1542_v48 }
 0x9db   :  { %v1546_v46 = vsub.f32 %v1536_v33, %v1544_v45  ;;  %v1547_v49 = vmul.f32 %v1545_v44, %v1545_v44 }
 0x9dd   :  { %1549 = vadd.xlane.f32.xlu0 %v1547_v49  ;;  %v1548_v57 = vmul.f32 %v1546_v46, %v1546_v46 }
 0x9df   :  { %1551 = vadd.xlane.f32.xlu1 %v1548_v57 }
 0xa6a   :  { %v1550_v8 = vpop.xlane.xlu0 %1549 }
 0xa6b   :  { %v1553_v39 = vmul.f32 0.0078125, %v1550_v8 }
 0xa6c   :  { %v1552_v10 = vpop.xlane.xlu1 %1551 }
 0xa6d   :  { %v1555_v11 = vadd.f32 1e-12, %v1553_v39  ;;  %v1554_v12 = vmul.f32 0.0078125, %v1552_v10 }
 0xa6f   :  { %3837 = vrsqrt.f32 %v1555_v11  ;;  %v1556_v13 = vadd.f32 1e-12, %v1554_v12 }
 0xa71   :  { %3839 = vrsqrt.f32 %v1556_v13  ;;  %v3881_v13 = vld [vmem:[%s4534_s24] sm:$0xff] }
 0xa79   :  { %v3838_v40 = vpop.eup %3837 }
 0xa7a   :  { %v1559_v53 = vmul.f32 %v3838_v40, %v1545_v44 }
 0xa7b   :  { %v3840_v14 = vpop.eup %3839 }
 0xa7c   :  { %v1560_v15 = vmul.f32 %v3840_v14, %v1546_v46  ;;  %v1567_v16 = vmul.f32 %v3136_v52, %v1559_v53  ;;  %v3882_v53 = vld [vmem:[%s4534_s24 + $0x8] sm:$0xff] }
 0xa7e   :  { %v1568_v18 = vmul.f32 %v3136_v52, %v1560_v15  ;;  %v4328_v19 = vadd.f32 %v3137_v17, %v1567_v16 }
 0xa80   :  { %v4330_v20 = vadd.f32 %v3137_v17, %v1568_v18 }
 0xa82   :  { %v1577_v22 = vpack.c.bf16 %v4330_v20, %v4328_v19 }
 0xa84   :  { %1790 = vmatmul.mubr.bf16.vlgmr.msra.gmra.mrb[24].mxu0 %v1577_v22  ;;  %3490 = vmatmul.mubr.bf16.vlgmr.msra.gmra.mrb[16].mxu1 %v1577_v22 }
 0xa85   :  { %3495 = vmatprep.mubr.msk.bf16.mxu0 %vm3964_vm0, %v3962_v4  ;;  %3533 = vmatprep.mubr.msk.bf16.mxu1 %vm3964_vm0, %v3962_v4 }
 0xb57   :  { %v1791_v28 = vpop.f32.mrb[24].mxu0  ;;  %v1834_v31 = vpop.f32.mrb[16].mxu1 }
 0xb58   :  { %v1792_v32 = vadd.f32 %v1791_v28, %v1617_v24  ;;  %v1835_v33 = vadd.f32 %v1834_v31, %v1625_v25  ;;  %v1793_v37 = vpop.f32.mrb[25].mxu0  ;;  %v3491_v38 = vpop.f32.mrb[17].mxu1 }
 0xb59   :  { %v1795_v21 = vpop.f32.mrb[26].mxu0  ;;  %v1837_v26 = vpop.f32.mrb[18].mxu1  ;;  %v1794_v59 = vadd.f32 %v1793_v37, %v1621_v34 }
 0xb5a   :  { %v4350_v47 = vmul.f32 %v3163_v29, %v1835_v33  ;;  %v1797_v41 = vpop.f32.mrb[27].mxu0  ;;  %v3492_v48 = vpop.f32.mrb[19].mxu1  ;;  %v1796_v44 = vadd.f32 %v1795_v21, %v1617_v24  ;;  %v1838_v45 = vadd.f32 %v1837_v26, %v1625_v25  ;;  %v1849_v49 = vmul.f32 %v3163_v29, %v1792_v32 }
 0xb5b   :  { %v1798_v46 = vadd.f32 %v1797_v41, %v1621_v34  ;;  %v1930_v57 = vmul.f32 %v3165_v9, %v1792_v32  ;;  %v2000_v58 = vmul.f32 %v3165_v9, %v1835_v33 }
 0xb5c   :  { %v1850_v61 = vmul.f32 %v3163_v29, %v1796_v44  ;;  %v1931_v62 = vmul.f32 %v3165_v9, %v1796_v44  ;;  %v4352_v63 = vmul.f32 %v3163_v29, %v1838_v45  ;;  %v2001_v0 = vmul.f32 %v3165_v9, %v1838_v45 }
 0xb5d   :  { %v1841_v50 = vpack.c.bf16 %v1798_v46, %v1794_v59  ;;  %v3711_v59 = vld [vmem:[%s4518_s7 + $0x50] sm:$0xff]  }
 0xb5e   :  { %v1851_v1 = vpack.c.bf16 %v1850_v61, %v1849_v49  ;;  %v1932_v51 = vpack.c.bf16 %v1931_v62, %v1930_v57  ;;  %v1921_v2 = vpack.c.bf16 %v4352_v63, %v4350_v47  ;;  %v2002_v3 = vpack.c.bf16 %v2001_v0, %v2000_v58  ;;  %v3709_v57 = vld [vmem:[%s4518_s7 + $0x40] sm:$0xff]   ;;  %v3710_v58 = vld [vmem:[%s4518_s7 + $0x48] sm:$0xff]   ;;  %v3712_v61 = vld [vmem:[%s4518_s7 + $0x58] sm:$0xff]  }
 0xb5f   :  { %3494 = vmatpush3.bf16.xpose.msra.mxu0 %v1841_v50  ;;  %3518 = vmatpush3.bf16.msra.mxu1 %v3709_v57  ;;  %v3713_v62 = vld [vmem:[%s4518_s7 + $0x60] sm:$0xff]   ;;  %v3714_v0 = vld [vmem:[%s4518_s7 + $0x68] sm:$0xff]  }
 0xb60   :  { %3499 = vmatprep.subr.bf16.mxu0 %v3962_v4  ;;  %3519 = vmatprep.subr.bf16.mxu1 %v3962_v4  ;;  %v3738_v57 = vld [vmem:[#allocation4 + $0x168] ss:$16 sps:$4 sm:$0xff]  }
 0xb63   :  { %3520 = vmatpush3.bf16.msra.mxu1 %v3710_v58  ;;  %v3741_v58 = vld [vmem:[#allocation4 + $0x180] ss:$16 sps:$4 sm:$0xff]  }
 0xb64   :  { %3521 = vmatprep.subr.bf16.mxu1 %v3962_v4 }
 0xb66   :  { %3496 = vmatmul.mubr.bf16.vlgmr.msra.gmra.mrb[28].mxu0 %v1851_v1 }
 0xb67   :  { %3500 = vmatpush3.bf16.xpose.msra.mxu0 %v1841_v50  ;;  %3501 = vmatprep.mubr.msk.bf16.mxu0 %vm3964_vm0, %v3962_v4  ;;  %v3715_v50 = vld [vmem:[%s4518_s7 + $0x70] sm:$0xff]  }
 0xb68   :  { %3505 = vmatprep.subr.bf16.mxu0 %v3962_v4  ;;  %3522 = vmatpush3.bf16.msra.mxu1 %v3711_v59  ;;  %v3743_v59 = vld [vmem:[#allocation4 + $0x184] ss:$16 sps:$4 sm:$0xff]  }
 0xb69   :  { %3523 = vmatprep.subr.bf16.mxu1 %v3962_v4 }
 0xb6c   :  { %3524 = vmatpush3.bf16.msra.mxu1 %v3712_v61  ;;  %v3744_v61 = vld [vmem:[#allocation4 + $0x188] ss:$16 sps:$4 sm:$0xff]  }
 0xb6d   :  { %3525 = vmatprep.subr.bf16.mxu1 %v3962_v4 }
 0xb6e   :  { %3502 = vmatmul.mubr.bf16.vlgmr.msra.gmra.mrb[32].mxu0 %v1932_v51 }
 0xb6f   :  { %3506 = vmatpush3.bf16.msra.mxu0 %v2002_v3  ;;  %3507 = vmatprep.mubr.msk.bf16.mxu0 %vm3964_vm0, %v3962_v4 }
 0xb70   :  { %3511 = vmatprep.subr.bf16.mxu0 %v3962_v4  ;;  %3526 = vmatpush3.bf16.msra.mxu1 %v3713_v62  ;;  %v3746_v62 = vld [vmem:[#allocation4 + $0x18c] ss:$16 sps:$4 sm:$0xff]  }
 0xb71   :  { %3527 = vmatprep.subr.bf16.mxu1 %v3962_v4 }
 0xb74   :  { %3528 = vmatpush3.bf16.msra.mxu1 %v3714_v0  ;;  %v3749_v0 = vld [vmem:[#allocation4 + $0x1a4] ss:$16 sps:$4 sm:$0xff]  }
 0xb75   :  { %3529 = vmatprep.subr.bf16.mxu1 %v3962_v4 }
 0xb78   :  { %3530 = vmatpush3.bf16.msra.mxu1 %v3715_v50  ;;  %v3752_v50 = vld [vmem:[#allocation4 + $0x1ac] ss:$16 sps:$4 sm:$0xff]  }
 0xb79   :  { %3531 = vmatprep.subr.bf16.mxu1 %v3962_v4 }
 0xc39   :  { %v1886_v35 = vpop.f32.mrb[28].mxu0 }
 0xc3a   :  { %v3497_v42 = vpop.f32.mrb[29].mxu0  ;;  %v1893_v6 = vmul.f32 0.125, %v1886_v35 }
 0xc3b   :  { %v1889_v5 = vpop.f32.mrb[30].mxu0 }
 0xc3c   :  { %v3498_v36 = vpop.f32.mrb[31].mxu0  ;;  %v1894_v10 = vmul.f32 0.125, %v1889_v5  ;;  %v1895_v15 = vadd.f32 %v3881_v13, %v1893_v6 }
 0xc3e   :  { %v1896_v17 = vadd.f32 %v3882_v53, %v1894_v10  ;;  %v1897_v18 = vsel %vm461_vm1, %v1895_v15, -inf }
 0xc40   :  { %v1900_v22 = vsel %vm461_vm1, %v1896_v17, -inf }
 0xc41   :  { %v1967_v43 = vpop.f32.mrb[32].mxu0 }
 0xc42   :  { %v1974_v7 = vmul.f32 0.125, %v1967_v43  ;;  %v3503_v8 = vpop.f32.mrb[33].mxu0 }
 0xc43   :  { %v1970_v39 = vpop.f32.mrb[34].mxu0 }
 0xc44   :  { %v1975_v11 = vmul.f32 0.125, %v1970_v39  ;;  %v3504_v12 = vpop.f32.mrb[35].mxu0  ;;  %v1976_v40 = vadd.f32 %v3881_v13, %v1974_v7 }
 0xc45   :  { %v3716_v12 = vld [vmem:[%s4518_s7 + $0x78] sm:$0xff]  }
 0xc46   :  { %v1978_v52 = vsel %vm461_vm1, %v1976_v40, -inf  ;;  %v1977_v14 = vadd.f32 %v3882_v53, %v1975_v11  ;;  %3532 = vmatpush3.bf16.msra.mxu1 %v3716_v12 }
 0xc47   :  { %1979 = vmax.xlane.f32.xlu0 %v1978_v52 }
 0xc48   :  { %v1981_v16 = vsel %vm461_vm1, %v1977_v14, -inf }
 0xc49   :  { %1982 = vmax.xlane.f32.xlu1 %v1981_v16 }
 0xc4b   :  { %1898 = vmax.xlane.f32.xlu0 %v1897_v18 }
 0xc4d   :  { %1901 = vmax.xlane.f32.xlu1 %v1900_v22 }
 0xcd4   :  { %v1980_v23 = vpop.xlane.xlu0 %1979 }
 0xcd5   :  { %v1984_v24 = vsub.f32 %v1976_v40, %v1980_v23  ;;  %v3717_v23 = vld [vmem:[#allocation4 + $0x100] ss:$16 sps:$4 sm:$0xff]  }
 0xcd6   :  { %v1983_v25 = vpop.xlane.xlu1 %1982 }
 0xcd7   :  { %v1986_v28 = vmul.f32 1.442695, %v1984_v24  ;;  %v1985_v29 = vsub.f32 %v1977_v14, %v1983_v25  ;;  %v3719_v24 = vld [vmem:[#allocation4 + $0x104] ss:$16 sps:$4 sm:$0xff]   ;;  %v3720_v25 = vld [vmem:[#allocation4 + $0x108] ss:$16 sps:$4 sm:$0xff]  }
 0xcd8   :  { %v1899_v31 = vpop.xlane.xlu0 %1898 }
 0xcd9   :  { %3841 = vpow2.f32 %v1986_v28  ;;  %v1988_v32 = vmul.f32 1.442695, %v1985_v29  ;;  %v1903_v33 = vsub.f32 %v1895_v15, %v1899_v31  ;;  %v3725_v28 = vld [vmem:[#allocation4 + $0x124] ss:$16 sps:$4 sm:$0xff]   ;;  %v3728_v29 = vld [vmem:[#allocation4 + $0x12c] ss:$16 sps:$4 sm:$0xff]  }
 0xcda   :  { %v1902_v34 = vpop.xlane.xlu1 %1901  ;;  %v3723_v31 = vld [vmem:[#allocation4 + $0x120] ss:$16 sps:$4 sm:$0xff]  }
 0xcdb   :  { %3843 = vpow2.f32 %v1988_v32  ;;  %v1905_v37 = vmul.f32 1.442695, %v1903_v33  ;;  %v1904_v38 = vsub.f32 %v1896_v17, %v1902_v34  ;;  %v3726_v32 = vld [vmem:[#allocation4 + $0x128] ss:$16 sps:$4 sm:$0xff]  }
 0xcdd   :  { %3845 = vpow2.f32 %v1905_v37  ;;  %v1907_v9 = vmul.f32 1.442695, %v1904_v38 }
 0xcdf   :  { %3847 = vpow2.f32 %v1907_v9 }
 0xce3   :  { %v3842_v21 = vpop.eup %3841 }
 0xce4   :  { %v1990_v26 = vsel %vm461_vm1, %v3842_v21, 0.0 }
 0xce5   :  { %v3844_v41 = vpop.eup %3843  ;;  %1991 = vadd.xlane.f32.xlu0 %v1990_v26  ;;  %v3731_v26 = vld [vmem:[#allocation4 + $0x144] ss:$16 sps:$4 sm:$0xff]  }
 0xce6   :  { %v1993_v48 = vsel %vm461_vm1, %v3844_v41, 0.0 }
 0xce7   :  { %v3846_v44 = vpop.eup %3845  ;;  %1994 = vadd.xlane.f32.xlu1 %v1993_v48  ;;  %v3729_v48 = vld [vmem:[#allocation4 + $0x140] ss:$16 sps:$4 sm:$0xff]  }
 0xce8   :  { %v1909_v45 = vsel %vm461_vm1, %v3846_v44, 0.0 }
 0xce9   :  { %v3848_v46 = vpop.eup %3847  ;;  %1910 = vadd.xlane.f32.xlu0 %v1909_v45  ;;  %v3737_v45 = vld [vmem:[#allocation4 + $0x164] ss:$16 sps:$4 sm:$0xff]  }
 0xcea   :  { %v1912_v49 = vsel %vm461_vm1, %v3848_v46, 0.0 }
 0xceb   :  { %1913 = vadd.xlane.f32.xlu1 %v1912_v49  ;;  %v3735_v49 = vld [vmem:[#allocation4 + $0x160] ss:$16 sps:$4 sm:$0xff]  }
 0xd72   :  { %v1992_v1 = vpop.xlane.xlu0 %1991 }
 0xd73   :  { %3849 = vrcp.f32 %v1992_v1  ;;  %v3747_v1 = vld [vmem:[#allocation4 + $0x1a0] ss:$16 sps:$4 sm:$0xff]  }
 0xd74   :  { %v1995_v51 = vpop.xlane.xlu1 %1994 }
 0xd75   :  { %3851 = vrcp.f32 %v1995_v51  ;;  %v3750_v51 = vld [vmem:[#allocation4 + $0x1a8] ss:$16 sps:$4 sm:$0xff]  }
 0xd76   :  { %v1911_v35 = vpop.xlane.xlu0 %1910 }
 0xd78   :  { %v1914_v3 = vpop.xlane.xlu1 %1913 }
 0xd79   :  { %3853 = vrcp.f32 %v1914_v3  ;;  %v3755_v3 = vld [vmem:[#allocation4 + $0x1c4] ss:$16 sps:$4 sm:$0xff]  }
 0xd7a   :  { %3855 = vrcp.f32 %v1911_v35  ;;  %v3758_v35 = vld [vmem:[#allocation4 + $0x1cc] ss:$16 sps:$4 sm:$0xff]  }
 0xd7d   :  { %v3850_v42 = vpop.eup %3849 }
 0xd7e   :  { %v1997_v36 = vmul.f32 %v3850_v42, %v3842_v21  ;;  %v3753_v42 = vld [vmem:[#allocation4 + $0x1c0] ss:$16 sps:$4 sm:$0xff]  }
 0xd7f   :  { %v3852_v5 = vpop.eup %3851 }
 0xd80   :  { %v1999_v43 = vmul.f32 %v3852_v5, %v3844_v41  ;;  %v3734_v41 = vld [vmem:[#allocation4 + $0x14c] ss:$16 sps:$4 sm:$0xff]   ;;  %v3756_v5 = vld [vmem:[#allocation4 + $0x1c8] ss:$16 sps:$4 sm:$0xff]  }
 0xd82   :  { %v2003_v6 = vpack.c.bf16 %v1999_v43, %v1997_v36  ;;  %v3761_v36 = vld [vmem:[#allocation4 + $0x1e4] ss:$16 sps:$4 sm:$0xff]   ;;  %v3764_v43 = vld [vmem:[#allocation4 + $0x1ec] ss:$16 sps:$4 sm:$0xff]  }
 0xd83   :  { %v3854_v7 = vpop.eup %3853 }
 0xd84   :  { %3508 = vmatmul.mubr.msk.bf16.vlgmr.msra.gmra.mrb[36].mxu0 %vm461_vm1, %v2003_v6  ;;  %v3856_v8 = vpop.eup %3855  ;;  %v1918_v39 = vmul.f32 %v3854_v7, %v3848_v46  ;;  %v3740_v46 = vld [vmem:[#allocation4 + $0x16c] ss:$16 sps:$4 sm:$0xff]   ;;  %v3759_v6 = vld [vmem:[#allocation4 + $0x1e0] ss:$16 sps:$4 sm:$0xff]   ;;  %v3762_v7 = vld [vmem:[#allocation4 + $0x1e8] ss:$16 sps:$4 sm:$0xff]  }
 0xd85   :  { %3512 = vmatpush3.bf16.msra.mxu0 %v1921_v2  ;;  %3513 = vmatprep.mubr.msk.bf16.mxu0 %vm3964_vm0, %v3962_v4  ;;  %v1916_v10 = vmul.f32 %v3856_v8, %v3846_v44  ;;  %v3185_v4 = vld [vmem:[%s4519_s8 + $0x1] ss:$0 sm:$0xff]  ;;  %v3732_v44 = vld [vmem:[#allocation4 + $0x148] ss:$16 sps:$4 sm:$0xff]  }
 0xd86   :  { %2468 = vmatprep.subr.bf16.mxu0 %v3719_v24  ;;  %v3768_v24 = vld [vmem:[#allocation6 + $0x180] sm:$0xff]  }
 0xd87   :  { %v1922_v11 = vpack.c.bf16 %v1918_v39, %v1916_v10 }
 0xd90   :  { %3514 = vmatmul.mubr.msk.bf16.vlgmr.msra.gmra.mrb[36].mxu0 %vm461_vm1, %v1922_v11 }
 0xd91   :  { %2500 = vmatprep.mubr.bf16.mxu0 %v3963_v30  ;;  %2469 = vmatpush1.bf16.msra.mxu0 %v3717_v23  ;;  %v3767_v23 = vld [vmem:[#allocation6 + $0x100] sm:$0xff]  }
 0xd92   :  { %2470 = vmatprep.subr.bf16.mxu0 %v3725_v28  ;;  %v3771_v28 = vld [vmem:[#allocation6 + $0x108] sm:$0xff]  }
 0xd95   :  { %2471 = vmatpush1.bf16.msra.mxu0 %v3723_v31  ;;  %v3773_v31 = vld [vmem:[#allocation6 + $0x150] sm:$0xff]  }
 0xd96   :  { %2472 = vmatprep.subr.bf16.mxu0 %v3731_v26  ;;  %v3783_v26 = vld [vmem:[#allocation6 + $0x120] sm:$0xff]  }
 0xd99   :  { %2473 = vmatpush1.bf16.msra.mxu0 %v3729_v48  ;;  %v3785_v48 = vld [vmem:[#allocation6 + $0x168] sm:$0xff]  }
 0xd9a   :  { %2474 = vmatprep.subr.bf16.mxu0 %v3737_v45  ;;  %v3787_v45 = vld [vmem:[#allocation6 + $0x128] sm:$0xff]  }
 0xd9d   :  { %2475 = vmatpush1.bf16.msra.mxu0 %v3735_v49  ;;  %v3789_v49 = vld [vmem:[#allocation6 + $0x170] sm:$0xff]  }
 0xd9e   :  { %2476 = vmatprep.subr.bf16.mxu0 %v3743_v59  ;;  %v3792_v59 = vld [vmem:[#allocation6 + $0x1b0] sm:$0xff]  }
 0xda1   :  { %2477 = vmatpush1.bf16.msra.mxu0 %v3741_v58  ;;  %v3791_v58 = vld [vmem:[#allocation6 + $0x130] sm:$0xff]  }
 0xda2   :  { %2478 = vmatprep.subr.bf16.mxu0 %v3749_v0  ;;  %v3795_v0 = vld [vmem:[#allocation6 + $0x138] sm:$0xff]  }
 0xda5   :  { %2479 = vmatpush1.bf16.msra.mxu0 %v3747_v1  ;;  %v3198_v1 = vld [vmem:[%s4523_s12 + $0x4] sm:$0xf] }
 0xda6   :  { %2480 = vmatprep.subr.bf16.mxu0 %v3755_v3  ;;  %v2299_v3 = vrot.slane %v3198_v1, %v4142_v56 }
 0xda9   :  { %2481 = vmatpush1.bf16.msra.mxu0 %v3753_v42  ;;  %v2303_v42 = vrot.slane %v3198_v1, %v862_v27 }
 0xdaa   :  { %2482 = vmatprep.subr.bf16.mxu0 %v3761_v36 }
 0xdad   :  { %2483 = vmatpush1.bf16.msra.mxu0 %v3759_v6 }
 0xe63   :  { %v2085_v13 = vpop.f32.mrb[36].mxu0 }
 0xe64   :  { %v3515_v47 = vpop.f32.mrb[37].mxu0 }
 0xe65   :  { %v2088_v63 = vpop.f32.mrb[38].mxu0 }
 0xe66   :  { %v2092_v2 = vpack.c.bf16 %v2088_v63, %v2085_v13  ;;  %v3516_v40 = vpop.f32.mrb[39].mxu0  ;;  %v3196_v63 = vld [vmem:[%s4520_s9 + $0x1] ss:$0 sm:$0xff] }
 0xe68   :  { %3534 = vmatmul.mubr.bf16.vlgmr.msra.gmra.mrb[20].mxu1 %v2092_v2 }
 0xe69   :  { %2543 = vmatprep.mubr.bf16.mxu1 %v3963_v30  ;;  %v3722_v30 = vld [vmem:[#allocation4 + $0x10c] ss:$16 sps:$4 sm:$0xff]  }
 0xe6a   :  { %2511 = vmatprep.subr.bf16.mxu1 %v3722_v30  ;;  %v3770_v30 = vld [vmem:[#allocation6 + $0x1c8] sm:$0xff]  }
 0xe6b   :  { %2512 = vmatpush1.bf16.msra.mxu1 %v3720_v25  ;;  %v3769_v25 = vld [vmem:[#allocation6 + $0x148] sm:$0xff]  }
 0xe6c   :  { %2513 = vmatprep.subr.bf16.mxu1 %v3728_v29  ;;  %v3772_v29 = vld [vmem:[#allocation6 + $0x188] sm:$0xff]  }
 0xe6f   :  { %2514 = vmatpush1.bf16.msra.mxu1 %v3726_v32  ;;  %v3774_v32 = vld [vmem:[#allocation6 + $0x1d0] sm:$0xff]  }
 0xe70   :  { %2515 = vmatprep.subr.bf16.mxu1 %v3734_v41  ;;  %v3784_v41 = vld [vmem:[#allocation6 + $0x1a0] sm:$0xff]  }
 0xe73   :  { %2516 = vmatpush1.bf16.msra.mxu1 %v3732_v44  ;;  %v3786_v44 = vld [vmem:[#allocation6 + $0x1e8] sm:$0xff]  }
 0xe74   :  { %2517 = vmatprep.subr.bf16.mxu1 %v3740_v46  ;;  %v3788_v46 = vld [vmem:[#allocation6 + $0x1a8] sm:$0xff]  }
 0xe77   :  { %2518 = vmatpush1.bf16.msra.mxu1 %v3738_v57  ;;  %v3790_v57 = vld [vmem:[#allocation6 + $0x1f0] sm:$0xff]  }
 0xe78   :  { %2519 = vmatprep.subr.bf16.mxu1 %v3746_v62  ;;  %v3794_v62 = vld [vmem:[#allocation6 + $0x1f8] sm:$0xff]  }
 0xe7b   :  { %2520 = vmatpush1.bf16.msra.mxu1 %v3744_v61  ;;  %v3793_v61 = vld [vmem:[#allocation6 + $0x178] sm:$0xff]  }
 0xe7c   :  { %2521 = vmatprep.subr.bf16.mxu1 %v3752_v50  ;;  %v3796_v50 = vld [vmem:[#allocation6 + $0x1b8] sm:$0xff]  }
 0xe7f   :  { %2522 = vmatpush1.bf16.msra.mxu1 %v3750_v51  ;;  %v2291_v51 = vrot.slane %v3198_v1, %v4139_v55 }
 0xe80   :  { %2523 = vmatprep.subr.bf16.mxu1 %v3758_v35  ;;  %v2295_v35 = vrot.slane %v3198_v1, %v4150_v60 }
 0xe83   :  { %2524 = vmatpush1.bf16.msra.mxu1 %v3756_v5 }
 0xe84   :  { %2525 = vmatprep.subr.bf16.mxu1 %v3764_v43 }
 0xe87   :  { %2526 = vmatpush1.bf16.msra.mxu1 %v3762_v7 }
 0xf3b   :  { %v2200_v52 = vpop.f32.mrb[20].mxu1 }
 0xf3c   :  { %v2201_v53 = vadd.f32 %v3185_v4, %v2200_v52  ;;  %v3535_v14 = vpop.f32.mrb[21].mxu1 }
 0xf3d   :  { %v2203_v15 = vpop.f32.mrb[22].mxu1 }
 0xf3e   :  { %v2204_v16 = vadd.f32 %v3185_v4, %v2203_v15  ;;  %v3536_v17 = vpop.f32.mrb[23].mxu1  ;;  %v2207_v18 = vadd.f32 %v2201_v53, %v4328_v19  ;;  %v3197_v53 = vld [vmem:[%s4521_s10 + $0x1] ss:$0 sm:$0xff] }
 0xf40   :  { %2213 = vadd.xlane.f32.xlu0 %v2207_v18  ;;  %v2208_v22 = vadd.f32 %v2204_v16, %v4330_v20 }
 0xf42   :  { %2215 = vadd.xlane.f32.xlu1 %v2208_v22 }
 0xfcd   :  { %v2214_v19 = vpop.xlane.xlu0 %2213 }
 0xfce   :  { %v2217_v33 = vmul.f32 0.0078125, %v2214_v19  ;;  %v3775_v19 = vld [vmem:[#allocation6 + $0x110] sm:$0xff]  }
 0xfcf   :  { %v2216_v20 = vpop.xlane.xlu1 %2215 }
 0xfd0   :  { %v4422_v34 = vsub.f32 %v2207_v18, %v2217_v33  ;;  %v2218_v37 = vmul.f32 0.0078125, %v2216_v20  ;;  %v3765_v18 = vld [vmem:[#allocation6 + $0x140] sm:$0xff]   ;;  %v3776_v33 = vld [vmem:[#allocation6 + $0x190] sm:$0xff]   ;;  %v3777_v20 = vld [vmem:[#allocation6 + $0x158] sm:$0xff]  }
 0xfd1   :  { %3365 = vmatprep.subr.bf16.mxu0 %v3765_v18 }
 0xfd2   :  { %v4424_v38 = vsub.f32 %v2208_v22, %v2218_v37  ;;  %v2221_v9 = vmul.f32 %v4422_v34, %v4422_v34  ;;  %v3766_v22 = vld [vmem:[#allocation6 + $0x1c0] sm:$0xff]   ;;  %v3779_v37 = vld [vmem:[#allocation6 + $0x118] sm:$0xff]  }
 0xfd3   :  { %3387 = vmatprep.subr.bf16.mxu1 %v3766_v22 }
 0xfd4   :  { %2223 = vadd.xlane.f32.xlu0 %v2221_v9  ;;  %v2222_v21 = vmul.f32 %v4424_v38, %v4424_v38  ;;  %v3781_v9 = vld [vmem:[#allocation6 + $0x160] sm:$0xff]  }
 0xfd6   :  { %2225 = vadd.xlane.f32.xlu1 %v2222_v21  ;;  %v3782_v21 = vld [vmem:[#allocation6 + $0x1e0] sm:$0xff]  }
0x1061   :  { %v2224_v8 = vpop.xlane.xlu0 %2223 }
0x1062   :  { %v2227_v39 = vmul.f32 0.0078125, %v2224_v8 }
0x1063   :  { %v2226_v10 = vpop.xlane.xlu1 %2225 }
0x1064   :  { %v2229_v11 = vadd.f32 1e-12, %v2227_v39  ;;  %v2228_v12 = vmul.f32 0.0078125, %v2226_v10 }
0x1066   :  { %3857 = vrsqrt.f32 %v2229_v11  ;;  %v2230_v13 = vadd.f32 1e-12, %v2228_v12 }
0x1068   :  { %3859 = vrsqrt.f32 %v2230_v13 }
0x1070   :  { %v3858_v47 = vpop.eup %3857 }
0x1071   :  { %v2233_v2 = vmul.f32 %v3858_v47, %v4422_v34  ;;  %v3778_v34 = vld [vmem:[#allocation6 + $0x1d8] sm:$0xff]  }
0x1072   :  { %v3860_v40 = vpop.eup %3859 }
0x1073   :  { %v2234_v4 = vmul.f32 %v3860_v40, %v4424_v38  ;;  %v2241_v52 = vmul.f32 %v3196_v63, %v2233_v2  ;;  %v3780_v38 = vld [vmem:[#allocation6 + $0x198] sm:$0xff]  }
0x1075   :  { %v2242_v14 = vmul.f32 %v3196_v63, %v2234_v4  ;;  %v4438_v15 = vadd.f32 %v3197_v53, %v2241_v52 }
0x1077   :  { %v4440_v16 = vadd.f32 %v3197_v53, %v2242_v14 }
0x1079   :  { %v2251_v17 = vpack.c.bf16 %v4440_v16, %v4438_v15 }
0x107b   :  { %2501 = vmatmul.mubr.bf16.vlgmr.msra.gmra.mrb[40].mxu0 %v2251_v17  ;;  %2544 = vmatmul.mubr.bf16.vlgmr.msra.gmra.mrb[24].mxu1 %v2251_v17 }
0x107c   :  { %3366 = vmatpush3.bf16.msra.mxu0 %v3767_v23  ;;  %3388 = vmatpush3.bf16.msra.mxu1 %v3768_v24 }
0x107d   :  { %3367 = vmatprep.subr.bf16.mxu0 %v3769_v25  ;;  %3389 = vmatprep.subr.bf16.mxu1 %v3770_v30 }
0x1080   :  { %3368 = vmatpush3.bf16.msra.mxu0 %v3771_v28  ;;  %3390 = vmatpush3.bf16.msra.mxu1 %v3772_v29 }
0x1081   :  { %3369 = vmatprep.subr.bf16.mxu0 %v3773_v31  ;;  %3391 = vmatprep.subr.bf16.mxu1 %v3774_v32 }
0x1084   :  { %3370 = vmatpush3.bf16.msra.mxu0 %v3775_v19  ;;  %3392 = vmatpush3.bf16.msra.mxu1 %v3776_v33 }
0x1085   :  { %3371 = vmatprep.subr.bf16.mxu0 %v3777_v20  ;;  %3393 = vmatprep.subr.bf16.mxu1 %v3778_v34 }
0x1088   :  { %3372 = vmatpush3.bf16.msra.mxu0 %v3779_v37  ;;  %3394 = vmatpush3.bf16.msra.mxu1 %v3780_v38 }
0x1089   :  { %3373 = vmatprep.subr.bf16.mxu0 %v3781_v9  ;;  %3395 = vmatprep.subr.bf16.mxu1 %v3782_v21 }
0x108c   :  { %3374 = vmatpush3.bf16.msra.mxu0 %v3783_v26  ;;  %3396 = vmatpush3.bf16.msra.mxu1 %v3784_v41 }
0x108d   :  { %3375 = vmatprep.subr.bf16.mxu0 %v3785_v48  ;;  %3397 = vmatprep.subr.bf16.mxu1 %v3786_v44 }
0x1090   :  { %3376 = vmatpush3.bf16.msra.mxu0 %v3787_v45  ;;  %3398 = vmatpush3.bf16.msra.mxu1 %v3788_v46 }
0x1091   :  { %3377 = vmatprep.subr.bf16.mxu0 %v3789_v49  ;;  %3399 = vmatprep.subr.bf16.mxu1 %v3790_v57 }
0x1094   :  { %3378 = vmatpush3.bf16.msra.mxu0 %v3791_v58  ;;  %3400 = vmatpush3.bf16.msra.mxu1 %v3792_v59 }
0x1095   :  { %3379 = vmatprep.subr.bf16.mxu0 %v3793_v61  ;;  %3401 = vmatprep.subr.bf16.mxu1 %v3794_v62 }
0x1098   :  { %3380 = vmatpush3.bf16.msra.mxu0 %v3795_v0  ;;  %3402 = vmatpush3.bf16.msra.mxu1 %v3796_v50 }
0x114e   :  { %v2502_v5 = vpop.f32.mrb[40].mxu0  ;;  %v2545_v36 = vpop.f32.mrb[24].mxu1 }
0x114f   :  { %v4452_v43 = vadd.f32 %v2502_v5, %v2291_v51  ;;  %v4454_v6 = vadd.f32 %v2545_v36, %v2299_v3  ;;  %v2504_v7 = vpop.f32.mrb[41].mxu0  ;;  %v2547_v8 = vpop.f32.mrb[25].mxu1 }
0x1150   :  { %v4456_v39 = vadd.f32 %v2504_v7, %v2295_v35  ;;  %v4458_v10 = vadd.f32 %v2547_v8, %v2303_v42  ;;  %v2506_v55 = vpop.f32.mrb[42].mxu0  ;;  %v2549_v11 = vpop.f32.mrb[26].mxu1 }
0x1151   :  { %v2562_v56 = vmul.f32 0.044715, %v4452_v43  ;;  %v2564_v60 = vmul.f32 0.044715, %v4454_v6  ;;  %v2507_v54 = vadd.f32 %v2506_v55, %v2291_v51  ;;  %v2550_v27 = vadd.f32 %v2549_v11, %v2299_v3  ;;  %v2508_v12 = vpop.f32.mrb[43].mxu0  ;;  %v2551_v13 = vpop.f32.mrb[27].mxu1 }
0x1152   :  { %v2563_v47 = vmul.f32 0.044715, %v4456_v39  ;;  %v2565_v63 = vmul.f32 0.044715, %v4458_v10  ;;  %v4464_v2 = vadd.f32 %v2508_v12, %v2295_v35  ;;  %v4466_v40 = vadd.f32 %v2551_v13, %v2303_v42 }
0x1153   :  { %v2570_v4 = vmul.f32 %v2562_v56, %v4452_v43  ;;  %v2572_v52 = vmul.f32 %v2564_v60, %v4454_v6  ;;  %v2566_v53 = vmul.f32 0.044715, %v2507_v54  ;;  %v2568_v14 = vmul.f32 0.044715, %v2550_v27 }
0x1154   :  { %v2571_v17 = vmul.f32 %v2563_v47, %v4456_v39  ;;  %v2573_v18 = vmul.f32 %v2565_v63, %v4458_v10  ;;  %v2567_v22 = vmul.f32 0.044715, %v4464_v2  ;;  %v2569_v23 = vmul.f32 0.044715, %v4466_v40 }
0x1155   :  { %v2578_v24 = vmul.f32 %v2570_v4, %v4452_v43  ;;  %v2580_v25 = vmul.f32 %v2572_v52, %v4454_v6  ;;  %v2574_v30 = vmul.f32 %v2566_v53, %v2507_v54  ;;  %v2576_v28 = vmul.f32 %v2568_v14, %v2550_v27 }
0x1156   :  { %v2579_v29 = vmul.f32 %v2571_v17, %v4456_v39  ;;  %v2581_v31 = vmul.f32 %v2573_v18, %v4458_v10  ;;  %v2575_v32 = vmul.f32 %v2567_v22, %v4464_v2  ;;  %v2577_v19 = vmul.f32 %v2569_v23, %v4466_v40 }
0x1157   :  { %v2586_v33 = vadd.f32 %v2578_v24, %v4452_v43  ;;  %v2588_v20 = vadd.f32 %v2580_v25, %v4454_v6  ;;  %v2582_v34 = vmul.f32 %v2574_v30, %v2507_v54  ;;  %v2584_v37 = vmul.f32 %v2576_v28, %v2550_v27 }
0x1158   :  { %v2583_v38 = vmul.f32 %v2575_v32, %v4464_v2  ;;  %v2585_v9 = vmul.f32 %v2577_v19, %v4466_v40  ;;  %v2587_v44 = vadd.f32 %v2579_v29, %v4456_v39  ;;  %v2589_v57 = vadd.f32 %v2581_v31, %v4458_v10 }
0x1159   :  { %v2594_v21 = vmul.f32 0.7978846, %v2586_v33  ;;  %v2596_v26 = vmul.f32 0.7978846, %v2588_v20  ;;  %v2590_v41 = vadd.f32 %v2582_v34, %v2507_v54  ;;  %v2592_v48 = vadd.f32 %v2584_v37, %v2550_v27 }
0x115a   :  { %v2591_v45 = vadd.f32 %v2583_v38, %v4464_v2  ;;  %v2595_v58 = vmul.f32 0.7978846, %v2587_v44  ;;  %v2593_v61 = vadd.f32 %v2585_v9, %v4466_v40  ;;  %v2597_v62 = vmul.f32 0.7978846, %v2589_v57 }
0x115b   :  { %3861 = vtanh.f32 %v2594_v21  ;;  %v2598_v46 = vmul.f32 0.7978846, %v2590_v41  ;;  %v2600_v49 = vmul.f32 0.7978846, %v2592_v48  ;;  %v2554_v5 = vmul.f32 0.5, %v4452_v43 }
0x115c   :  { %3863 = vtanh.f32 %v2596_v26  ;;  %v2599_v59 = vmul.f32 0.7978846, %v2591_v45  ;;  %v2601_v0 = vmul.f32 0.7978846, %v2593_v61  ;;  %v2558_v36 = vmul.f32 0.5, %v2507_v54 }
0x115d   :  { %3865 = vtanh.f32 %v2598_v46  ;;  %v2556_v55 = vmul.f32 0.5, %v4454_v6  ;;  %v2560_v11 = vmul.f32 0.5, %v2550_v27  ;;  %v2555_v12 = vmul.f32 0.5, %v4456_v39 }
0x115e   :  { %3867 = vtanh.f32 %v2600_v49  ;;  %v2559_v52 = vmul.f32 0.5, %v4464_v2  ;;  %v2557_v54 = vmul.f32 0.5, %v4458_v10  ;;  %v2561_v18 = vmul.f32 0.5, %v4466_v40  ;;  %v3232_v10 = vld [vmem:[%s4525_s14 + $0x1] ss:$0 sm:$0xff] }
0x115f   :  { %3869 = vtanh.f32 %v2595_v58 }
0x1160   :  { %3871 = vtanh.f32 %v2599_v59 }
0x1161   :  { %3873 = vtanh.f32 %v2597_v62 }
0x1162   :  { %3875 = vtanh.f32 %v2601_v0 }
0x1165   :  { %v3862_v50 = vpop.eup %3861 }
0x1166   :  { %v3864_v1 = vpop.eup %3863  ;;  %v2610_v51 = vadd.f32 1.0, %v3862_v50 }
0x1167   :  { %v3866_v3 = vpop.eup %3865  ;;  %v2612_v35 = vadd.f32 1.0, %v3864_v1 }
0x1168   :  { %v3868_v42 = vpop.eup %3867  ;;  %v2614_v7 = vadd.f32 1.0, %v3866_v3  ;;  %v2618_v47 = vmul.f32 %v2610_v51, %v2554_v5  ;;  %v3267_v5 = vld [vmem:[%s4526_s15 + $0x1] ss:$0 sm:$0xff] }
0x1169   :  { %v3870_v8 = vpop.eup %3869  ;;  %v2616_v56 = vadd.f32 1.0, %v3868_v42  ;;  %v2620_v14 = vmul.f32 %v2612_v35, %v2556_v55 }
0x116a   :  { %v3872_v60 = vpop.eup %3871  ;;  %v2611_v13 = vadd.f32 1.0, %v3870_v8  ;;  %v2622_v63 = vmul.f32 %v2614_v7, %v2558_v36  ;;  %v3268_v8 = vld [vmem:[%s4527_s16 + $0x1] ss:$0 sm:$0xff] }
0x116b   :  { %v3874_v4 = vpop.eup %3873  ;;  %v2615_v53 = vadd.f32 1.0, %v3872_v60  ;;  %v2624_v17 = vmul.f32 %v2616_v56, %v2560_v11 }
0x116c   :  { %v3876_v43 = vpop.eup %3875  ;;  %v2613_v6 = vadd.f32 1.0, %v3874_v4  ;;  %v2626_v27 = vpack.c.bf16 %v2622_v63, %v2618_v47  ;;  %v2619_v22 = vmul.f32 %v2611_v13, %v2555_v12 }
0x116d   :  { %v2623_v23 = vmul.f32 %v2615_v53, %v2559_v52  ;;  %v2617_v24 = vadd.f32 1.0, %v3876_v43  ;;  %v2628_v39 = vpack.c.bf16 %v2624_v17, %v2620_v14 }
0x116e   :  { %v2621_v30 = vmul.f32 %v2613_v6, %v2557_v54 }
0x116f   :  { %v2627_v25 = vpack.c.bf16 %v2623_v23, %v2619_v22  ;;  %v2625_v28 = vmul.f32 %v2617_v24, %v2561_v18 }
0x1171   :  { %2927 = vmatprep.mubr.bf16.mxu0 %v2627_v25  ;;  %v2629_v29 = vpack.c.bf16 %v2625_v28, %v2621_v30 }
0x1172   :  { %2928 = vmatmul.mubr.bf16.vlgmr.msra.gmra.mrb[44].mxu0 %v2626_v27 }
0x1173   :  { %2968 = vmatprep.mubr.bf16.mxu1 %v2629_v29 }
0x1174   :  { %2969 = vmatmul.mubr.bf16.vlgmr.msra.gmra.mrb[28].mxu1 %v2628_v39 }
0x1245   :  { %v3381_v2 = vpop.f32.mrb[44].mxu0 }
0x1246   :  { %v3382_v40 = vpop.f32.mrb[45].mxu0 }
0x1247   :  { %v3403_v31 = vpop.f32.mrb[28].mxu1  ;;  %v3383_v32 = vadd.f32 %v3382_v40, %v3381_v2  ;;  %v3384_v19 = vpop.f32.mrb[46].mxu0 }
0x1248   :  { %v3404_v33 = vpop.f32.mrb[29].mxu1  ;;  %v3385_v20 = vpop.f32.mrb[47].mxu0 }
0x1249   :  { %v2930_v34 = vadd.f32 %v3383_v32, %v3232_v10  ;;  %v3405_v37 = vadd.f32 %v3404_v33, %v3403_v31  ;;  %v3406_v38 = vpop.f32.mrb[30].mxu1  ;;  %v3386_v9 = vadd.f32 %v3385_v20, %v3384_v19 }
0x124a   :  { %v3407_v21 = vpop.f32.mrb[31].mxu1 }
0x124b   :  { %v2971_v26 = vadd.f32 %v3405_v37, %v2930_v34  ;;  %v2933_v41 = vadd.f32 %v3386_v9, %v3232_v10  ;;  %v3408_v48 = vadd.f32 %v3407_v21, %v3406_v38 }
0x124d   :  { %v2974_v44 = vadd.f32 %v3408_v48, %v2933_v41  ;;  %v2977_v45 = vadd.f32 %v2971_v26, %v4438_v15 }
0x124f   :  { %2983 = vadd.xlane.f32.xlu0 %v2977_v45  ;;  %v2978_v46 = vadd.f32 %v2974_v44, %v4440_v16 }
0x1251   :  { %2985 = vadd.xlane.f32.xlu1 %v2978_v46 }
0x12dc   :  { %v2984_v49 = vpop.xlane.xlu0 %2983 }
0x12dd   :  { %v2987_v57 = vmul.f32 0.0078125, %v2984_v49 }
0x12de   :  { %v2986_v58 = vpop.xlane.xlu1 %2985 }
0x12df   :  { %v2989_v59 = vsub.f32 %v2977_v45, %v2987_v57  ;;  %v2988_v61 = vmul.f32 0.0078125, %v2986_v58 }
0x12e1   :  { %v2990_v62 = vsub.f32 %v2978_v46, %v2988_v61  ;;  %v2991_v0 = vmul.f32 %v2989_v59, %v2989_v59 }
0x12e3   :  { %2993 = vadd.xlane.f32.xlu0 %v2991_v0  ;;  %v2992_v50 = vmul.f32 %v2990_v62, %v2990_v62 }
0x12e5   :  { %2995 = vadd.xlane.f32.xlu1 %v2992_v50 }
0x1370   :  { %v2994_v1 = vpop.xlane.xlu0 %2993 }
0x1371   :  { %v2997_v51 = vmul.f32 0.0078125, %v2994_v1 }
0x1372   :  { %v2996_v3 = vpop.xlane.xlu1 %2995 }
0x1373   :  { %v2999_v35 = vadd.f32 1e-12, %v2997_v51  ;;  %v2998_v42 = vmul.f32 0.0078125, %v2996_v3 }
0x1375   :  { %3877 = vrsqrt.f32 %v2999_v35  ;;  %v3000_v15 = vadd.f32 1e-12, %v2998_v42 }
0x1377   :  { %3879 = vrsqrt.f32 %v3000_v15 }
0x137f   :  { %v3878_v16 = vpop.eup %3877 }
0x1380   :  { %v3003_v36 = vmul.f32 %v3878_v16, %v2989_v59 }
0x1381   :  { %v3880_v7 = vpop.eup %3879 }
0x1382   :  { %v3011_v55 = vmul.f32 %v3267_v5, %v3003_v36  ;;  %v3004_v11 = vmul.f32 %v3880_v7, %v2990_v62 }
0x1384   :  { %v3019_v56 = vadd.f32 %v3268_v8, %v3011_v55  ;;  %v3012_v60 = vmul.f32 %v3267_v5, %v3004_v11 }
0x1386   :  { %3021 = vst [vmem:[%s4528_s17] sm:$0xff] %v3019_v56  ;;  %v3020_v12 = vadd.f32 %v3268_v8, %v3012_v60 }
0x1388   :  { %3022 = vst [vmem:[%s4528_s17 + $0x8] sm:$0xff] %v3020_v12 }
0x1389   :  { %3027 = vsyncpa [#allocation3], 1 }
0x138a   :  { %3028 = vsyncpa [#allocation5], 1 }

</bundles_post_ra>
